<compile_context>
chip_gen: v6e
topology: v6e:2x2x1
jax: 0.10.0
libtpu: 0.0.40
codegen_flags: <defaults>
</compile_context>

<pallas_src>
import jax
import jax.numpy as jnp
import numpy as np
from jax.experimental import pallas as pl
from jax.experimental.pallas import tpu as pltpu

MARGIN = 0.2
PAIR_EPS = 1e-6      # torch pairwise_distance eps (TripletMarginLoss)
NORM_EPS = 1e-12     # F.normalize eps
PROT_EPS = 1e-5
EMA_OLD = 0.9
EMA_NEW = 0.1


def _catl_kernel(x_ref, lab_ref, w_ref, prott_ref, psq_ref, prow_ref,
                 lsum_ref, labsum_ref, xnsum_ref,
                 lsum_acc, labc_acc, xnsum_acc):
    step = pl.program_id(1)                     # inner ("arbitrary") batch axis

    @pl.when(step == 0)
    def _init():
        lsum_acc[...] = jnp.zeros_like(lsum_acc)
        labc_acc[...] = jnp.zeros_like(labc_acc)
        xnsum_acc[...] = jnp.zeros_like(xnsum_acc)

    x = x_ref[...].astype(jnp.float32)          # (TB, C, D); bf16 inputs DMA'd as-is
    lab = lab_ref[...].astype(jnp.float32)      # (TB, C)
    TB, C, D = x.shape
    N = TB * C

    # --- F.normalize(p=2, eps=1e-12), done flat on (N, D): rsqrt * mul ------
    x2d = x.reshape(N, D)                                   # leading-dim merge only
    sumsq = jnp.sum(x2d * x2d, axis=-1, keepdims=True)      # (N, 1)
    inv = jax.lax.rsqrt(jnp.maximum(sumsq, NORM_EPS * NORM_EPS))
    xn2d = x2d * inv                                        # (N, D)
    xn_sq = sumsq * inv * inv                               # ||xn||^2, no re-reduce
    xn_row = jnp.sum(xn2d, axis=-1, keepdims=True)          # (N, 1) for analytic eps

    prot_t = prott_ref[...]                                 # (D, C), hoisted transpose
    psq = psq_ref[...]                                      # (1, C) = ||prot_c||^2
    prow = prow_ref[...]                                    # (1, C) = sum_d prot_cd

    # --- squared cdist via ||a||^2 + ||b||^2 - 2ab: one plain-NN MXU matmul --
    xp = jnp.dot(xn2d, prot_t, preferred_element_type=jnp.float32)   # (N, C)
    d2 = jnp.maximum(xn_sq + psq - 2.0 * xp, 0.0)                    # (N, C)

    # --- negative selection, kept 2-D (~3 live (N, C) temporaries) ----------
    col = jax.lax.broadcasted_iota(jnp.int32, (N, C), 1)
    row_cls = jax.lax.broadcasted_iota(jnp.int32, (N, 1), 0) % C
    diag = col == row_cls                                            # (N, C)

    # fused positive term: d2_pos - 2*eps*prow_pos in one masked reduce
    pos_t = jnp.sum(jnp.where(diag, d2 - (2.0 * PAIR_EPS) * prow, 0.0),
                    axis=-1, keepdims=True)                          # (N, 1)
    d2_off = jnp.where(diag, jnp.inf, d2)                            # (N, C)
    d2_neg = jnp.min(d2_off, axis=-1, keepdims=True)                 # (N, 1)
    cand = jnp.where(d2_off <= d2_neg, col, C)                       # argsort-first ties
    neg_idx = jnp.min(cand, axis=-1, keepdims=True)                  # (N, 1)
    prow_neg = jnp.sum(jnp.where(cand == neg_idx, prow, 0.0),
                       axis=-1, keepdims=True)                       # (N, 1)

    # --- TripletMarginLoss(margin=0.2, p=2, eps=1e-6, reduction='none') -----
    eps_c = D * PAIR_EPS * PAIR_EPS
    d_pos = jnp.sqrt(jnp.maximum(pos_t + 2.0 * PAIR_EPS * xn_row + eps_c, 0.0))
    d_neg = jnp.sqrt(jnp.maximum(
        d2_neg + 2.0 * PAIR_EPS * (xn_row - prow_neg) + eps_c, 0.0))
    trip = jnp.maximum(d_pos - d_neg + MARGIN, 0.0)                  # (N, 1)

    # per-sample label-weighted mean: weights lab/lab_row precomputed flat in
    # the wrapper (exact division, matches PyTorch's 0/0 -> NaN behavior).
    lsum_acc[...] += trip * w_ref[...].astype(jnp.float32)           # (N, 1)

    # partial sums for the prototype EMA (finished in the JAX epilogue)
    labc_acc[...] += jnp.sum(lab, axis=0, keepdims=True)             # (1, C)
    xn3 = xn2d.reshape(TB, C, D)                                     # leading-dim split
    xnsum_acc[...] += jnp.sum(lab[:, :, None] * xn3, axis=0)         # (C, D)

    @pl.when(step == pl.num_programs(1) - 1)
    def _finalize():
        lsum_ref[...] = jnp.sum(lsum_acc[...], keepdims=True)        # (1, 1)
        labsum_ref[...] = labc_acc[...]                              # (1, C)
        xnsum_ref[...] = xnsum_acc[...]                              # (C, D)


def _vmem_limit_bytes():
    """Scoped-VMEM limit per chip family (v7x has only 64 MiB physical)."""
    kind = ""
    try:
        kind = jax.devices()[0].device_kind.lower()
    except Exception:
        pass
    if ("v4" in kind) or ("v5" in kind) or ("v6" in kind):
        return 96 * 1024 * 1024        # 128 MiB physical VMEM
    return 48 * 1024 * 1024            # v7x (64 MiB physical) / unknown: conservative


def _estimate_vmem(tb, C, D, x_item, lab_item):
    """Rough per-step VMEM footprint: double-buffered input blocks + in-kernel
    f32 copies of the (TB,C,D) slab + the live (N,C) temporaries + residents."""
    n = tb * C
    io = 2 * (tb * C * D * x_item + tb * C * lab_item + n * 4)   # x, lab, w (dbl-buffered)
    f32_3d = 4 * tb * C * D * 4                                  # x2d, xn2d, lab*xn, headroom
    cc = 6 * n * C * 4                                           # (N, C) temporaries
    resident = 2 * (D * C + 2 * C) * 4 + (C * D + C + n) * 4     # prot stats + accumulators
    return io + f32_3d + cc + resident


def _pick_tiling(B, C, D, x_item, lab_item, vmem_limit,
                 batch_tile=None, core_split=None):
    budget = int(0.75 * vmem_limit)

    def largest_tb(nb):
        best, tb = None, 8
        while tb <= nb:
            if nb % tb == 0 and _estimate_vmem(tb, C, D, x_item, lab_item) <= budget:
                best = tb
            tb += 8
        return best

    if batch_tile is not None and core_split is not None:
        return core_split, batch_tile
    if batch_tile is not None:
        nc = 2 if B % (2 * batch_tile) == 0 else 1
        return nc, batch_tile
    splits = (core_split,) if core_split is not None else (2, 1)
    for nc in splits:
        if nc is None or B % nc:
            continue
        tb = largest_tb(B // nc)
        if tb is not None:
            return nc, tb
    return 1, B                     # fallback: whole batch in a single block


def class_aware_triplet_loss(inputs, label, pos_prot, only_update=False,
                             batch_tile=None, core_split=None):
    """Functional equivalent of ClassAwareTripletLoss.forward.

    inputs:   (B, C, D) float (native dtype is DMA'd as-is; bf16 halves DMA)
    label:    (B, C, 1) or (B, C) float (0/1)
    pos_prot: (C, D) float prototype state
    Returns (loss_scalar, new_pos_prot[f32]).
    """
    B, C, D = inputs.shape
    lab2d = label[:, :, 0] if label.ndim == 3 else label
    prot = pos_prot.astype(jnp.float32)

    # Hoisted per-call prototype stats and pre-normalized sample weights
    # (tiny O(C*D) / O(B*C) XLA work; removes per-grid-step kernel passes).
    prot_t = prot.T                                       # (D, C): plain NN matmul operand
    psq = jnp.sum(prot * prot, axis=-1)[None, :]          # (1, C)
    prow = jnp.sum(prot, axis=-1)[None, :]                # (1, C)
    labf = lab2d.astype(jnp.float32)
    w_flat = (labf / jnp.sum(labf, axis=-1, keepdims=True)).reshape(B * C, 1)

    vmem_limit = _vmem_limit_bytes()
    nc, tb = _pick_tiling(B, C, D, jnp.dtype(inputs.dtype).itemsize,
                          jnp.dtype(lab2d.dtype).itemsize, vmem_limit,
                          batch_tile, core_split)
    if B % (nc * tb) != 0:
        raise ValueError(f"core_split={nc}, batch_tile={tb} incompatible with batch {B}")
    if not (tb % 8 == 0 or (nc == 1 and tb == B)):
        raise ValueError(f"batch tile {tb} must be a multiple of 8 (or the whole batch)")
    spc = B // (nc * tb)            # grid steps per core slice

    lsum_p, labsum_p, xnsum_p = pl.pallas_call(
        _catl_kernel,
        out_shape=(jax.ShapeDtypeStruct((nc, 1, 1), jnp.float32),
                   jax.ShapeDtypeStruct((nc, 1, C), jnp.float32),
                   jax.ShapeDtypeStruct((nc, C, D), jnp.float32)),
        grid_spec=pltpu.PrefetchScalarGridSpec(
            num_scalar_prefetch=0,
            grid=(nc, spc),
            in_specs=[
                pl.BlockSpec((tb, C, D), lambda p, i: (p * spc + i, 0, 0)),   # embeddings
                pl.BlockSpec((tb, C), lambda p, i: (p * spc + i, 0)),         # labels
                pl.BlockSpec((tb * C, 1), lambda p, i: (p * spc + i, 0)),     # flat weights
                pl.BlockSpec((D, C), lambda p, i: (0, 0)),                    # prot^T (resident)
                pl.BlockSpec((1, C), lambda p, i: (0, 0)),                    # ||prot||^2
                pl.BlockSpec((1, C), lambda p, i: (0, 0)),                    # prot row sums
            ],
            out_specs=(
                pl.BlockSpec((None, 1, 1), lambda p, i: (p, 0, 0)),           # loss partial
                pl.BlockSpec((None, 1, C), lambda p, i: (p, 0, 0)),           # label counts
                pl.BlockSpec((None, C, D), lambda p, i: (p, 0, 0)),           # lab*xn sums
            ),
            scratch_shapes=[
                pltpu.VMEM((tb * C, 1), jnp.float32),   # per-sample loss slab
                pltpu.VMEM((1, C), jnp.float32),        # sum_b label (per class)
                pltpu.VMEM((C, D), jnp.float32),        # sum_b label * xn
            ]),
        compiler_params=pltpu.CompilerParams(
            # leading axis splits the batch across TensorCores on v7x; the
            # inner axis is the resident-accumulator reduction.
            dimension_semantics=("parallel", "arbitrary"),
            vmem_limit_bytes=vmem_limit),
    )(inputs, lab2d, w_flat, prot_t, psq, prow)

    # --- tiny O(C*D) epilogue: combine per-core partials + exact-division EMA
    lsum = jnp.sum(lsum_p)
    labc = jnp.sum(labsum_p, axis=0)[0]                   # (C,)
    xnsum = jnp.sum(xnsum_p, axis=0)                      # (C, D)
    total = jnp.sum(labc)

    loss = jnp.where(total > 0.0, lsum / B, jnp.float32(0.0))
    if only_update:
        # TODO(synk): the kernel still computes the (unused) triplet math in
        # this static mode; skipping it would need a second kernel variant.
        loss = jnp.float32(0.0)

    cur_prot = xnsum / (labc[:, None] + PROT_EPS)
    prot_zero = jnp.all(prot == 0.0, axis=-1, keepdims=True)
    upd = jnp.where(prot_zero, cur_prot, EMA_OLD * prot + EMA_NEW * cur_prot)
    new_prot = jnp.where(labc[:, None] > 0.0, upd, prot)
    new_prot = jnp.where(total > 0.0, new_prot, prot)
    # TODO(synk): the `pos_prot is None` lazy-init branch of the PyTorch module
    # is handled by always passing a prototype tensor (functional state).
    return loss, new_prot


def _reference(inputs, label, pos_prot):
    """Pure-JAX reference mirroring the PyTorch module (for validation)."""
    x = inputs.astype(jnp.float32)
    lab = label[:, :, 0].astype(jnp.float32)
    prot = pos_prot.astype(jnp.float32)
    C = prot.shape[0]
    nrm = jnp.sqrt(jnp.sum(x * x, axis=-1, keepdims=True))
    xn = x / jnp.maximum(nrm, NORM_EPS)
    dist = jnp.sqrt(jnp.sum((xn[:, :, None, :] - prot[None, None, :, :]) ** 2, axis=-1))
    eye = jnp.eye(C, dtype=bool)[None]
    neg_idx = jnp.argmin(jnp.where(eye, jnp.inf, dist), axis=-1)
    negatives = prot[neg_idx]
    d_pos = jnp.sqrt(jnp.sum((xn - prot[None] + PAIR_EPS) ** 2, axis=-1))
    d_neg = jnp.sqrt(jnp.sum((xn - negatives + PAIR_EPS) ** 2, axis=-1))
    trip = jnp.maximum(d_pos - d_neg + MARGIN, 0.0)
    per_b = (trip * lab).sum(-1) / lab.sum(-1)
    total = lab.sum()
    loss = jnp.where(total > 0, per_b.mean(), 0.0)
    label_c = lab.sum(0)
    cur = (lab[:, :, None] * xn).sum(0) / (label_c[:, None] + PROT_EPS)
    pz = jnp.all(prot == 0.0, axis=-1, keepdims=True)
    upd = jnp.where(pz, cur, EMA_OLD * prot + EMA_NEW * cur)
    newp = jnp.where(label_c[:, None] > 0, upd, prot)
    newp = jnp.where(total > 0, newp, prot)
    return loss, newp


if __name__ == "__main__":
    key = jax.random.PRNGKey(0)
    k1, k2, k3 = jax.random.split(key, 3)
    B, C, D = 32, 8, 128   # batch, tot_classes, embedding dim

    inputs = jax.random.normal(k1, (B, C, D), dtype=jnp.float32)
    lab = (jax.random.uniform(k2, (B, C)) > 0.5).astype(jnp.float32)
    lab = lab.at[:, 0].set(1.0)           # every sample has >= 1 active class
    label = lab[:, :, None]               # (B, C, 1), like the PyTorch module
    pos_prot = jax.random.normal(k3, (C, D), dtype=jnp.float32)

    # batch_tile=8, core_split=2 -> grid (2, 2): exercises the parallel core
    # split and the init / accumulate / finalize path of the inner axis.
    loss, new_prot = class_aware_triplet_loss(inputs, label, pos_prot,
                                              only_update=False,
                                              batch_tile=8, core_split=2)
    jax.block_until_ready((loss, new_prot))
    assert loss.shape == () and new_prot.shape == (C, D)

    ref_loss, ref_prot = _reference(inputs, label, pos_prot)
    np.testing.assert_allclose(np.asarray(loss), np.asarray(ref_loss),
                               rtol=2e-2, atol=2e-2)
    np.testing.assert_allclose(np.asarray(new_prot), np.asarray(ref_prot),
                               rtol=2e-2, atol=2e-2)
    print("KERNEL_OK")
</pallas_src>

<mosaic_0001>
module attributes {stable_mosaic.version = 11 : i64} {
  func.func @_catl_kernel(%arg0: i32, %arg1: i32, %arg2: memref<8x8x128xf32, #tpu.memory_space<vmem>>, %arg3: memref<8x8xf32, #tpu.memory_space<vmem>>, %arg4: memref<64x1xf32, #tpu.memory_space<vmem>>, %arg5: memref<128x8xf32, #tpu.memory_space<vmem>>, %arg6: memref<1x8xf32, #tpu.memory_space<vmem>>, %arg7: memref<1x8xf32, #tpu.memory_space<vmem>>, %arg8: memref<1x1x1xf32, #tpu.memory_space<vmem>>, %arg9: memref<1x1x8xf32, #tpu.memory_space<vmem>>, %arg10: memref<1x8x128xf32, #tpu.memory_space<vmem>>, %arg11: memref<64x1xf32, #tpu.memory_space<vmem>>, %arg12: memref<1x8xf32, #tpu.memory_space<vmem>>, %arg13: memref<8x128xf32, #tpu.memory_space<vmem>>) attributes {dimension_semantics = [#tpu.dimension_semantics<parallel>, #tpu.dimension_semantics<arbitrary>], iteration_bounds = array<i64: 2, 2>, scalar_prefetch = 0 : i64, scratch_operands = 3 : i64, tpu.core_type = #tpu.core_type<tc>, window_params = [{transform_indices = @transform_0, window_bounds = array<i64: 8, 8, 128>}, {transform_indices = @transform_1, window_bounds = array<i64: 8, 8>}, {transform_indices = @transform_2, window_bounds = array<i64: 64, 1>}, {pipeline_mode = #tpu.pipeline_mode<synchronous>, transform_indices = @transform_3, window_bounds = array<i64: 128, 8>}, {pipeline_mode = #tpu.pipeline_mode<synchronous>, transform_indices = @transform_4, window_bounds = array<i64: 1, 8>}, {pipeline_mode = #tpu.pipeline_mode<synchronous>, transform_indices = @transform_5, window_bounds = array<i64: 1, 8>}, {transform_indices = @transform_6, window_bounds = array<i64: 1, 1, 1>}, {transform_indices = @transform_7, window_bounds = array<i64: 1, 1, 8>}, {transform_indices = @transform_8, window_bounds = array<i64: 1, 8, 128>}]} {
    %c0_i32 = arith.constant 0 : i32
    %0 = arith.cmpi eq, %arg1, %c0_i32 : i32
    %1 = arith.extui %0 : i1 to i32
    %c0_i32_0 = arith.constant 0 : i32
    %2 = arith.cmpi ne, %1, %c0_i32_0 : i32
    scf.if %2 {
      %cst_55 = arith.constant 0.000000e+00 : f32
      %119 = vector.broadcast %cst_55 : f32 to vector<64x1xf32>
      %c0_56 = arith.constant 0 : index
      %c0_57 = arith.constant 0 : index
      %120 = vector.load %arg11[%c0_56, %c0_57] : memref<64x1xf32, #tpu.memory_space<vmem>>, vector<64x1xf32>
      tpu.vector_store %arg11[%c0_56, %c0_57], %119 {strides = array<i32>} : memref<64x1xf32, #tpu.memory_space<vmem>>, vector<64x1xf32>,
      %cst_58 = arith.constant 0.000000e+00 : f32
      %121 = vector.broadcast %cst_58 : f32 to vector<1x8xf32>
      %c0_59 = arith.constant 0 : index
      %c0_60 = arith.constant 0 : index
      %122 = vector.load %arg12[%c0_59, %c0_60] : memref<1x8xf32, #tpu.memory_space<vmem>>, vector<1x8xf32>
      tpu.vector_store %arg12[%c0_59, %c0_60], %121 {strides = array<i32>} : memref<1x8xf32, #tpu.memory_space<vmem>>, vector<1x8xf32>,
      %cst_61 = arith.constant 0.000000e+00 : f32
      %123 = vector.broadcast %cst_61 : f32 to vector<8x128xf32>
      %c0_62 = arith.constant 0 : index
      %c0_63 = arith.constant 0 : index
      %124 = vector.load %arg13[%c0_62, %c0_63] : memref<8x128xf32, #tpu.memory_space<vmem>>, vector<8x128xf32>
      tpu.vector_store %arg13[%c0_62, %c0_63], %123 {strides = array<i32>} : memref<8x128xf32, #tpu.memory_space<vmem>>, vector<8x128xf32>,
    } else {
    }
    %c0 = arith.constant 0 : index
    %c0_1 = arith.constant 0 : index
    %c0_2 = arith.constant 0 : index
    %3 = vector.load %arg2[%c0, %c0_1, %c0_2] : memref<8x8x128xf32, #tpu.memory_space<vmem>>, vector<8x8x128xf32>
    %c0_3 = arith.constant 0 : index
    %c0_4 = arith.constant 0 : index
    %4 = vector.load %arg3[%c0_3, %c0_4] : memref<8x8xf32, #tpu.memory_space<vmem>>, vector<8x8xf32>
    %5 = vector.shape_cast %3 : vector<8x8x128xf32> to vector<64x128xf32>
    %6 = arith.mulf %5, %5 : vector<64x128xf32>
    %cst = arith.constant dense<0.000000e+00> : vector<64xf32>
    %7 = vector.multi_reduction <add>, %6, %cst [1] : vector<64x128xf32> to vector<64xf32>
    %8 = vector.shape_cast %7 : vector<64xf32> to vector<64x1xf32>
    %cst_5 = arith.constant 1.000000e-24 : f32
    %9 = vector.broadcast %cst_5 : f32 to vector<64x1xf32>
    %10 = arith.maximumf %8, %9 : vector<64x1xf32>
    %11 = math.rsqrt %10 : vector<64x1xf32>
    %12 = vector.broadcast %11 : vector<64x1xf32> to vector<64x128xf32>
    %13 = arith.mulf %5, %12 : vector<64x128xf32>
    %14 = arith.mulf %8, %11 : vector<64x1xf32>
    %15 = arith.mulf %14, %11 : vector<64x1xf32>
    %cst_6 = arith.constant dense<0.000000e+00> : vector<64xf32>
    %16 = vector.multi_reduction <add>, %13, %cst_6 [1] : vector<64x128xf32> to vector<64xf32>
    %17 = vector.shape_cast %16 : vector<64xf32> to vector<64x1xf32>
    %c0_7 = arith.constant 0 : index
    %c0_8 = arith.constant 0 : index
    %18 = vector.load %arg5[%c0_7, %c0_8] : memref<128x8xf32, #tpu.memory_space<vmem>>, vector<128x8xf32>
    %c0_9 = arith.constant 0 : index
    %c0_10 = arith.constant 0 : index
    %19 = vector.load %arg6[%c0_9, %c0_10] : memref<1x8xf32, #tpu.memory_space<vmem>>, vector<1x8xf32>
    %c0_11 = arith.constant 0 : index
    %c0_12 = arith.constant 0 : index
    %20 = vector.load %arg7[%c0_11, %c0_12] : memref<1x8xf32, #tpu.memory_space<vmem>>, vector<1x8xf32>
    %cst_13 = arith.constant dense<0.000000e+00> : vector<64x8xf32>
    %21 = tpu.matmul %13, %18, %cst_13 {dimension_numbers = #tpu.dot_dimension_numbers<[1], [0], [0], [1], [0, 0, 1, 1], [], []>} : vector<64x128xf32>, vector<128x8xf32>, vector<64x8xf32> -> vector<64x8xf32>
    %22 = vector.broadcast %15 : vector<64x1xf32> to vector<64x8xf32>
    %23 = vector.broadcast %19 : vector<1x8xf32> to vector<64x8xf32>
    %24 = arith.addf %22, %23 : vector<64x8xf32>
    %cst_14 = arith.constant 2.000000e+00 : f32
    %25 = vector.broadcast %cst_14 : f32 to vector<64x8xf32>
    %26 = arith.mulf %25, %21 : vector<64x8xf32>
    %27 = arith.subf %24, %26 : vector<64x8xf32>
    %cst_15 = arith.constant 0.000000e+00 : f32
    %28 = vector.broadcast %cst_15 : f32 to vector<64x8xf32>
    %29 = arith.maximumf %27, %28 : vector<64x8xf32>
    %30 = tpu.iota {dimensions = array<i32: 1>} : vector<64x8xi32>
    %31 = tpu.iota {dimensions = array<i32: 0>} : vector<64x1xi32>
    %c8_i32 = arith.constant 8 : i32
    %c0_i32_16 = arith.constant 0 : i32
    %32 = arith.cmpi eq, %c8_i32, %c0_i32_16 : i32
    %c1_i32 = arith.constant 1 : i32
    %33 = arith.select %32, %c1_i32, %c8_i32 : i32
    %34 = vector.broadcast %33 : i32 to vector<64x1xi32>
    %35 = arith.remsi %31, %34 : vector<64x1xi32>
    %c0_i32_17 = arith.constant 0 : i32
    %36 = vector.broadcast %c0_i32_17 : i32 to vector<64x1xi32>
    %37 = arith.cmpi ne, %35, %36 : vector<64x1xi32>
    %c0_i32_18 = arith.constant 0 : i32
    %38 = vector.broadcast %c0_i32_18 : i32 to vector<64x1xi32>
    %39 = arith.cmpi slt, %35, %38 : vector<64x1xi32>
    %c0_i32_19 = arith.constant 0 : i32
    %40 = arith.cmpi slt, %33, %c0_i32_19 : i32
    %41 = vector.broadcast %40 : i1 to vector<64x1xi1>
    %42 = vector.broadcast %41 : vector<64x1xi1> to vector<64x1xi1>
    %43 = arith.xori %39, %42 : vector<64x1xi1>
    %44 = arith.andi %43, %37 : vector<64x1xi1>
    %45 = vector.broadcast %33 : i32 to vector<64x1xi32>
    %46 = arith.addi %35, %45 : vector<64x1xi32>
    %47 = arith.select %44, %46, %35 : vector<64x1xi1>, vector<64x1xi32>
    %48 = vector.broadcast %47 : vector<64x1xi32> to vector<64x8xi32>
    %49 = arith.cmpi eq, %30, %48 : vector<64x8xi32>
    %cst_20 = arith.constant 2.000000e-06 : f32
    %50 = vector.broadcast %cst_20 : f32 to vector<1x8xf32>
    %51 = arith.mulf %50, %20 : vector<1x8xf32>
    %52 = vector.broadcast %51 : vector<1x8xf32> to vector<64x8xf32>
    %53 = arith.subf %29, %52 : vector<64x8xf32>
    %cst_21 = arith.constant 0.000000e+00 : f32
    %54 = vector.broadcast %cst_21 : f32 to vector<64x8xf32>
    %55 = arith.select %49, %53, %54 : vector<64x8xi1>, vector<64x8xf32>
    %cst_22 = arith.constant dense<0.000000e+00> : vector<64xf32>
    %56 = vector.multi_reduction <add>, %55, %cst_22 [1] : vector<64x8xf32> to vector<64xf32>
    %57 = vector.shape_cast %56 : vector<64xf32> to vector<64x1xf32>
    %cst_23 = arith.constant 0x7F800000 : f32
    %58 = vector.broadcast %cst_23 : f32 to vector<64x8xf32>
    %59 = arith.select %49, %58, %29 : vector<64x8xi1>, vector<64x8xf32>
    %cst_24 = arith.constant dense<0x7F800000> : vector<64xf32>
    %60 = vector.multi_reduction <minimumf>, %59, %cst_24 [1] : vector<64x8xf32> to vector<64xf32>
    %61 = vector.shape_cast %60 : vector<64xf32> to vector<64x1xf32>
    %62 = vector.broadcast %61 : vector<64x1xf32> to vector<64x8xf32>
    %63 = arith.cmpf ole, %59, %62 : vector<64x8xf32>
    %c8_i32_25 = arith.constant 8 : i32
    %64 = vector.broadcast %c8_i32_25 : i32 to vector<64x8xi32>
    %65 = arith.select %63, %30, %64 : vector<64x8xi1>, vector<64x8xi32>
    %cst_26 = arith.constant dense<2147483647> : vector<64xi32>
    %66 = vector.multi_reduction <minsi>, %65, %cst_26 [1] : vector<64x8xi32> to vector<64xi32>
    %67 = vector.shape_cast %66 : vector<64xi32> to vector<64x1xi32>
    %68 = vector.broadcast %67 : vector<64x1xi32> to vector<64x8xi32>
    %69 = arith.cmpi eq, %65, %68 : vector<64x8xi32>
    %cst_27 = arith.constant 0.000000e+00 : f32
    %70 = vector.shape_cast %20 : vector<1x8xf32> to vector<1x8xf32>
    %71 = vector.broadcast %70 : vector<1x8xf32> to vector<64x8xf32>
    %72 = vector.broadcast %cst_27 : f32 to vector<64x8xf32>
    %73 = arith.select %69, %71, %72 : vector<64x8xi1>, vector<64x8xf32>
    %cst_28 = arith.constant dense<0.000000e+00> : vector<64xf32>
    %74 = vector.multi_reduction <add>, %73, %cst_28 [1] : vector<64x8xf32> to vector<64xf32>
    %75 = vector.shape_cast %74 : vector<64xf32> to vector<64x1xf32>
    %cst_29 = arith.constant 2.000000e-06 : f32
    %76 = vector.broadcast %cst_29 : f32 to vector<64x1xf32>
    %77 = arith.mulf %76, %17 : vector<64x1xf32>
    %78 = arith.addf %57, %77 : vector<64x1xf32>
    %cst_30 = arith.constant 1.280000e-10 : f32
    %79 = vector.broadcast %cst_30 : f32 to vector<64x1xf32>
    %80 = arith.addf %78, %79 : vector<64x1xf32>
    %cst_31 = arith.constant 0.000000e+00 : f32
    %81 = vector.broadcast %cst_31 : f32 to vector<64x1xf32>
    %82 = arith.maximumf %80, %81 : vector<64x1xf32>
    %83 = math.sqrt %82 : vector<64x1xf32>
    %84 = arith.subf %17, %75 : vector<64x1xf32>
    %cst_32 = arith.constant 2.000000e-06 : f32
    %85 = vector.broadcast %cst_32 : f32 to vector<64x1xf32>
    %86 = arith.mulf %85, %84 : vector<64x1xf32>
    %87 = arith.addf %61, %86 : vector<64x1xf32>
    %cst_33 = arith.constant 1.280000e-10 : f32
    %88 = vector.broadcast %cst_33 : f32 to vector<64x1xf32>
    %89 = arith.addf %87, %88 : vector<64x1xf32>
    %cst_34 = arith.constant 0.000000e+00 : f32
    %90 = vector.broadcast %cst_34 : f32 to vector<64x1xf32>
    %91 = arith.maximumf %89, %90 : vector<64x1xf32>
    %92 = math.sqrt %91 : vector<64x1xf32>
    %93 = arith.subf %83, %92 : vector<64x1xf32>
    %cst_35 = arith.constant 2.000000e-01 : f32
    %94 = vector.broadcast %cst_35 : f32 to vector<64x1xf32>
    %95 = arith.addf %93, %94 : vector<64x1xf32>
    %cst_36 = arith.constant 0.000000e+00 : f32
    %96 = vector.broadcast %cst_36 : f32 to vector<64x1xf32>
    %97 = arith.maximumf %95, %96 : vector<64x1xf32>
    %c0_37 = arith.constant 0 : index
    %c0_38 = arith.constant 0 : index
    %98 = vector.load %arg11[%c0_37, %c0_38] : memref<64x1xf32, #tpu.memory_space<vmem>>, vector<64x1xf32>
    %c0_39 = arith.constant 0 : index
    %c0_40 = arith.constant 0 : index
    %99 = vector.load %arg4[%c0_39, %c0_40] : memref<64x1xf32, #tpu.memory_space<vmem>>, vector<64x1xf32>
    %100 = arith.mulf %97, %99 : vector<64x1xf32>
    %101 = arith.addf %98, %100 : vector<64x1xf32>
    %c0_41 = arith.constant 0 : index
    %c0_42 = arith.constant 0 : index
    %102 = vector.load %arg11[%c0_41, %c0_42] : memref<64x1xf32, #tpu.memory_space<vmem>>, vector<64x1xf32>
    tpu.vector_store %arg11[%c0_41, %c0_42], %101 {strides = array<i32>} : memref<64x1xf32, #tpu.memory_space<vmem>>, vector<64x1xf32>,
    %c0_43 = arith.constant 0 : index
    %c0_44 = arith.constant 0 : index
    %103 = vector.load %arg12[%c0_43, %c0_44] : memref<1x8xf32, #tpu.memory_space<vmem>>, vector<1x8xf32>
    %cst_45 = arith.constant dense<0.000000e+00> : vector<8xf32>
    %104 = vector.multi_reduction <add>, %4, %cst_45 [0] : vector<8x8xf32> to vector<8xf32>
    %105 = vector.shape_cast %104 : vector<8xf32> to vector<1x8xf32>
    %106 = arith.addf %103, %105 : vector<1x8xf32>
    %c0_46 = arith.constant 0 : index
    %c0_47 = arith.constant 0 : index
    %107 = vector.load %arg12[%c0_46, %c0_47] : memref<1x8xf32, #tpu.memory_space<vmem>>, vector<1x8xf32>
    tpu.vector_store %arg12[%c0_46, %c0_47], %106 {strides = array<i32>} : memref<1x8xf32, #tpu.memory_space<vmem>>, vector<1x8xf32>,
    %108 = vector.shape_cast %13 : vector<64x128xf32> to vector<8x8x128xf32>
    %c0_48 = arith.constant 0 : index
    %c0_49 = arith.constant 0 : index
    %109 = vector.load %arg13[%c0_48, %c0_49] : memref<8x128xf32, #tpu.memory_space<vmem>>, vector<8x128xf32>
    %110 = vector.shape_cast %4 : vector<8x8xf32> to vector<8x8x1xf32>
    %111 = vector.broadcast %110 : vector<8x8x1xf32> to vector<8x8x128xf32>
    %112 = arith.mulf %111, %108 : vector<8x8x128xf32>
    %cst_50 = arith.constant dense<0.000000e+00> : vector<8x128xf32>
    %113 = vector.multi_reduction <add>, %112, %cst_50 [0] : vector<8x8x128xf32> to vector<8x128xf32>
    %114 = arith.addf %109, %113 : vector<8x128xf32>
    %c0_51 = arith.constant 0 : index
    %c0_52 = arith.constant 0 : index
    %115 = vector.load %arg13[%c0_51, %c0_52] : memref<8x128xf32, #tpu.memory_space<vmem>>, vector<8x128xf32>
    tpu.vector_store %arg13[%c0_51, %c0_52], %114 {strides = array<i32>} : memref<8x128xf32, #tpu.memory_space<vmem>>, vector<8x128xf32>,
    %c1_i32_53 = arith.constant 1 : i32
    %116 = arith.cmpi eq, %arg1, %c1_i32_53 : i32
    %117 = arith.extui %116 : i1 to i32
    %c0_i32_54 = arith.constant 0 : i32
    %118 = arith.cmpi ne, %117, %c0_i32_54 : i32
    scf.if %118 {
      %c0_55 = arith.constant 0 : index
      %c0_56 = arith.constant 0 : index
      %119 = vector.load %arg11[%c0_55, %c0_56] : memref<64x1xf32, #tpu.memory_space<vmem>>, vector<64x1xf32>
      %120 = vector.shape_cast %119 : vector<64x1xf32> to vector<1x64x1xf32>
      %cst_57 = arith.constant dense<0.000000e+00> : vector<1xf32>
      %121 = vector.multi_reduction <add>, %120, %cst_57 [1, 2] : vector<1x64x1xf32> to vector<1xf32>
      %122 = vector.shape_cast %121 : vector<1xf32> to vector<1x1x1xf32>
      %123 = vector.extract %122[0, 0, 0] : f32 from vector<1x1x1xf32>
      %124 = vector.broadcast %123 : f32 to vector<1x1xf32>
      %c0_58 = arith.constant 0 : index
      %c0_59 = arith.constant 0 : index
      %c0_60 = arith.constant 0 : index
      %125 = vector.load %arg8[%c0_58, %c0_59, %c0_60] : memref<1x1x1xf32, #tpu.memory_space<vmem>>, vector<1x1x1xf32>
      %126 = vector.shape_cast %125 : vector<1x1x1xf32> to vector<1x1xf32>
      %127 = vector.shape_cast %124 : vector<1x1xf32> to vector<1x1x1xf32>
      tpu.vector_store %arg8[%c0_58, %c0_59, %c0_60], %127 {strides = array<i32>} : memref<1x1x1xf32, #tpu.memory_space<vmem>>, vector<1x1x1xf32>,
      %c0_61 = arith.constant 0 : index
      %c0_62 = arith.constant 0 : index
      %128 = vector.load %arg12[%c0_61, %c0_62] : memref<1x8xf32, #tpu.memory_space<vmem>>, vector<1x8xf32>
      %c0_63 = arith.constant 0 : index
      %c0_64 = arith.constant 0 : index
      %c0_65 = arith.constant 0 : index
      %129 = vector.load %arg9[%c0_63, %c0_64, %c0_65] : memref<1x1x8xf32, #tpu.memory_space<vmem>>, vector<1x1x8xf32>
      %130 = vector.shape_cast %129 : vector<1x1x8xf32> to vector<1x8xf32>
      %131 = vector.shape_cast %128 : vector<1x8xf32> to vector<1x1x8xf32>
      tpu.vector_store %arg9[%c0_63, %c0_64, %c0_65], %131 {strides = array<i32>} : memref<1x1x8xf32, #tpu.memory_space<vmem>>, vector<1x1x8xf32>,
      %c0_66 = arith.constant 0 : index
      %c0_67 = arith.constant 0 : index
      %132 = vector.load %arg13[%c0_66, %c0_67] : memref<8x128xf32, #tpu.memory_space<vmem>>, vector<8x128xf32>
      %c0_68 = arith.constant 0 : index
      %c0_69 = arith.constant 0 : index
      %c0_70 = arith.constant 0 : index
      %133 = vector.load %arg10[%c0_68, %c0_69, %c0_70] : memref<1x8x128xf32, #tpu.memory_space<vmem>>, vector<1x8x128xf32>
      %134 = vector.shape_cast %133 : vector<1x8x128xf32> to vector<8x128xf32>
      %135 = vector.shape_cast %132 : vector<8x128xf32> to vector<1x8x128xf32>
      tpu.vector_store %arg10[%c0_68, %c0_69, %c0_70], %135 {strides = array<i32>} : memref<1x8x128xf32, #tpu.memory_space<vmem>>, vector<1x8x128xf32>,
    } else {
    }
    return
  }
  func.func @transform_0(%arg0: i32, %arg1: i32) -> (i32, i32, i32) {
    %c2_i32 = arith.constant 2 : i32
    %0 = arith.muli %arg0, %c2_i32 : i32
    %1 = arith.addi %0, %arg1 : i32
    %c0_i32 = arith.constant 0 : i32
    %c0_i32_0 = arith.constant 0 : i32
    %c0_i32_1 = arith.constant 0 : i32
    return %1, %c0_i32, %c0_i32_0 : i32, i32, i32
  }
  func.func @transform_1(%arg0: i32, %arg1: i32) -> (i32, i32) {
    %c2_i32 = arith.constant 2 : i32
    %0 = arith.muli %arg0, %c2_i32 : i32
    %1 = arith.addi %0, %arg1 : i32
    %c0_i32 = arith.constant 0 : i32
    %c0_i32_0 = arith.constant 0 : i32
    return %1, %c0_i32 : i32, i32
  }
  func.func @transform_2(%arg0: i32, %arg1: i32) -> (i32, i32) {
    %c2_i32 = arith.constant 2 : i32
    %0 = arith.muli %arg0, %c2_i32 : i32
    %1 = arith.addi %0, %arg1 : i32
    %c0_i32 = arith.constant 0 : i32
    %c0_i32_0 = arith.constant 0 : i32
    return %1, %c0_i32 : i32, i32
  }
  func.func @transform_3(%arg0: i32, %arg1: i32) -> (i32, i32) {
    %c0_i32 = arith.constant 0 : i32
    %c0_i32_0 = arith.constant 0 : i32
    %c0_i32_1 = arith.constant 0 : i32
    return %c0_i32, %c0_i32_0 : i32, i32
  }
  func.func @transform_4(%arg0: i32, %arg1: i32) -> (i32, i32) {
    %c0_i32 = arith.constant 0 : i32
    %c0_i32_0 = arith.constant 0 : i32
    %c0_i32_1 = arith.constant 0 : i32
    return %c0_i32, %c0_i32_0 : i32, i32
  }
  func.func @transform_5(%arg0: i32, %arg1: i32) -> (i32, i32) {
    %c0_i32 = arith.constant 0 : i32
    %c0_i32_0 = arith.constant 0 : i32
    %c0_i32_1 = arith.constant 0 : i32
    return %c0_i32, %c0_i32_0 : i32, i32
  }
  func.func @transform_6(%arg0: i32, %arg1: i32) -> (i32, i32, i32) {
    %c0_i32 = arith.constant 0 : i32
    %c0_i32_0 = arith.constant 0 : i32
    %c0_i32_1 = arith.constant 0 : i32
    return %arg0, %c0_i32, %c0_i32_0 : i32, i32, i32
  }
  func.func @transform_7(%arg0: i32, %arg1: i32) -> (i32, i32, i32) {
    %c0_i32 = arith.constant 0 : i32
    %c0_i32_0 = arith.constant 0 : i32
    %c0_i32_1 = arith.constant 0 : i32
    return %arg0, %c0_i32, %c0_i32_0 : i32, i32, i32
  }
  func.func @transform_8(%arg0: i32, %arg1: i32) -> (i32, i32, i32) {
    %c0_i32 = arith.constant 0 : i32
    %c0_i32_0 = arith.constant 0 : i32
    %c0_i32_1 = arith.constant 0 : i32
    return %arg0, %c0_i32, %c0_i32_0 : i32, i32, i32
  }
}

</mosaic_0001>

<bundles_post_ra>
// kernel: tpu_custom_call.1
= control target key start
LH: loop header
LB: loop body
LE: loop exit
PB: predicated region body
PF: predicated region fallthrough
CT: control target
= control target key end

     0   :  { %14 = vsyncpa [#allocation6], 0  ;;  %s2898_s0 = inlined_call_operand.vmem [shape: f32[32,8,128], index: 0, kind: input, shape index: {}]   ;;  %s2899_s1 = inlined_call_operand.vmem [shape: f32[32,8], index: 1, kind: input, shape index: {}]   ;;  %s2900_s2 = inlined_call_operand.vmem [shape: f32[256,1], index: 2, kind: input, shape index: {}]   ;;  %s2901_s3 = inlined_call_operand.vmem [shape: f32[128,8], index: 3, kind: input, shape index: {}]   ;;  %s2902_s4 = inlined_call_operand.vmem [shape: f32[1,8], index: 4, kind: input, shape index: {}]   ;;  %s2903_s5 = inlined_call_operand.vmem [shape: f32[1,8], index: 5, kind: input, shape index: {}]   ;;  %s2904_s6 = inlined_call_operand.vmem [shape: f32[2,1,1], index: 6, kind: output, shape index: {0}]   ;;  %s2905_s7 = inlined_call_operand.hbm [shape: f32[2,1,8], index: 7, kind: output, shape index: {1}]   ;;  %s2906_s8 = inlined_call_operand.hbm [shape: f32[2,8,128], index: 8, kind: output, shape index: {2}]  }
   0x1   :  { %16 = vsyncpa [#allocation6 + $0x1], 0 }
   0x2   :  { %17 = vsyncpa [#allocation8], 0 }
   0x3   :  { %19 = vsyncpa [#allocation8 + $0x1], 0  ;;  %s2042_s27 = smov 0   ;;  %s2044_s28 = smov 0  }
   0x4   :  { %s2046_s29 = smov 0   ;;  %s2048_s30 = smov 0  }
   0x5   :  { %s2050_s9 = smov 0   ;;  %s2052_s10 = smov 0  }
   0x6   :  { %s2054_s11 = smov 0   ;;  %s2056_s12 = smov 0  }
   0x7 LB: > { %2913 = sst [smem:[#allocation11_spill]] %s1968_s28  ;;  %s1615_s13 = sadd.s32 4294967295, %s1992_s12   ;;  %s1992_s12 = sphi %s2056_s12, %s25_s12   ;;  %s1988_s11 = sphi %s2054_s11, %s2942_s11   ;;  %s1984_s10 = sphi %s2052_s10, %s2941_s10   ;;  %s1980_s9 = sphi %s2050_s9, %s2940_s9   ;;  %s1976_s30 = sphi %s2048_s30, %s2939_s30   ;;  %s1972_s29 = sphi %s2046_s29, %s2938_s29   ;;  %s1968_s28 = sphi %s2044_s28, %s2937_s28   ;;  %s1964_s27 = sphi %s2042_s27, %s2936_s27  }
   0x8   : > { %2914 = sst [smem:[#allocation12_spill]] %s1972_s29  ;;  %s1616_s14 = sadd.s32 4294967294, %s1992_s12  }
   0x9   : > { %2915 = sst [smem:[#allocation13_spill]] %s1984_s10  ;;  %s34_s15 = sadd.s32 1, %s1984_s10 }
   0xa   : > { %2916 = sst [smem:[#allocation14_spill]] %s1988_s11  ;;  %p35_p0 = scmp.ge.s32.totalorder %s34_s15, 2 }
   0xb   : > { %s37_s16 = sadd.s32 1, %s1988_s11  ;;  %p233_p1 = scmp.ne.s32.totalorder %s1972_s29, %s1968_s28 }
   0xc   : > { %p234_p2 = scmp.eq.s32.totalorder %s1615_s13, 3  ;;  %s2944_s15 = smov (%p35_p0, %s34_s15), 0 }
   0xd   : > { %2917 = sst [smem:[#allocation15_spill]] %s2944_s15  ;;  %s2946_s16 = smov (!%p35_p0, %s37_s16), %s1988_s11 }
   0xe   : > { %p2091_p3 = por %p234_p2, %p233_p1  ;;  %p239_p4 = scmp.ne.s32.totalorder %s1968_s28, %s1964_s27 }
   0xf   : > { %p39_p5 = scmp.ge.s32.totalorder %s2946_s16, 2  ;;  %p240_p6 = scmp.eq.s32.totalorder %s1616_s14, 3 }
  0x10   : > { %p1625_p7 = scmp.ge.s32.totalorder %s1992_s12, 1  ;;  %p330_p8 = scmp.lt.s32.totalorder %s1992_s12, 5 }
  0x11   : > { %s2948_s16 = smov (%p39_p5, %s2946_s16), 0  ;;  %p2101_p9 = por %p240_p6, %p239_p4 }
  0x12   : > { %2919 = sst [smem:[#allocation16_spill]] %s2948_s16  ;;  %p331_p10 = pnand %p1625_p7, %p330_p8 }
  0x13   : > { %s2920_s18 = scalar_select %p2101_p9, 1, 0 }
  0x14   : > { %s220_s19 = ssub.s32 %s1988_s11, %s2948_s16  ;;  %s223_s20 = sadd.s32 1, %s1972_s29 }
  0x15   : > { %2921 = sst [smem:[#allocation17_spill]] %s2920_s18  ;;  %p221_p11 = scmp.eq.s32.totalorder %s220_s19, 0 }
  0x16   : > { %334 = sbr.rel (%p331_p10) target bundleno = 1300 (0x514), region = 44  ;;  %s2112_s22 = sand.u32 (!%p331_p10), 1, %s1968_s28  }
  0x17   : > { %s2109_s21 = scalar_select %p221_p11, %s1972_s29, %s223_s20  }
  0x18   : > { %s1627_s23 = sshll.u32 (!%p331_p10), %s1980_s9, 1  ;;  %s1626_s24 = sshll.u32 (!%p331_p10), %s2112_s22, 3 }
  0x19   : > { %2922 = sst [smem:[#allocation18_spill]] %s2109_s21  ;;  %s387_s25 = sadd.s32 (!%p331_p10), %s1976_s30, %s1627_s23 }
  0x1a   : > { %s1628_s26 = sshll.u32 (!%p331_p10), %s387_s25, 3  ;;  %p398_p12 = scmp.lt.s32.totalorder (!%p331_p10), %s387_s25, 3 }
  0x1b   : > { %p389_p13 = scmp.lt.s32.totalorder %s1628_s26, 31  ;;  %p414_p0 = scmp.lt.s32.totalorder %s1980_s9, 1 }
  0x1c   : > { %s2950_s25 = smov (!%p398_p12, %s387_s25), 3  ;;  %s378_s19 = scalar_lea.vmem [#allocation5], %s2112_s22 }
  0x1d   : > { %s2952_s26 = smov (!%p389_p13, %s1628_s26), 31  ;;  %s1631_s13 = sshll.u32 %s2950_s25, 3 }
  0x1e   : > { %s1629_s14 = sshll.u32 %s2952_s26, 3  ;;  %s2121_s16 = scalar_lea.vmem %s2899_s1, %s1631_s13 }
  0x1f   : > { %s2126_s10 = scalar_lea.vmem %s2898_s0, %s1629_s14  ;;  %s2131_s29 = scalar_lea.vmem %s2900_s2, %s1629_s14 }
  0x20   : > { %s2134_s28 = scalar_select %p414_p0, %s1980_s9, 1 }
  0x21   : > { %s2141_s13 = scalar_lea.vmem [#allocation7], %s1626_s24  ;;  %p1635_p1 = scmp.ne.s32.totalorder %s1976_s30, 0 }
  0x22   : > { %s416_s18 = scalar_lea.vmem %s2904_s6, %s2134_s28 }
  0x23   : > { %420 = sbr.rel (%p1635_p1) target bundleno = 46 (0x2e), region = 48 }
  0x28   : > { %vm421_vm0 = vcmask 7168   ;;  %vm430_vm1 = vcmask 57344   ;;  %v1994_v0 = vmov 0.0  }
  0x29   : > { %422 = vst.msk [vmem:[#allocation2] sm:$0xff] %vm421_vm0, %v1994_v0  ;;  %423 = vst.msk [vmem:[#allocation2 + $0x8] sm:$0xff] %vm421_vm0, %v1994_v0 }
  0x2a   : > { %424 = vst.msk [vmem:[#allocation2 + $0x10] sm:$0xff] %vm421_vm0, %v1994_v0  ;;  %425 = vst.msk [vmem:[#allocation2 + $0x18] sm:$0xff] %vm421_vm0, %v1994_v0 }
  0x2b   : > { %426 = vst.msk [vmem:[#allocation2 + $0x20] sm:$0xff] %vm421_vm0, %v1994_v0  ;;  %427 = vst.msk [vmem:[#allocation2 + $0x28] sm:$0xff] %vm421_vm0, %v1994_v0 }
  0x2c   : > { %428 = vst.msk [vmem:[#allocation2 + $0x30] sm:$0xff] %vm421_vm0, %v1994_v0  ;;  %429 = vst.msk [vmem:[#allocation2 + $0x38] sm:$0xff] %vm421_vm0, %v1994_v0 }
  0x2d   : > { %432 = vst [vmem:[#allocation4] sm:$0xff] %v1994_v0  ;;  %431 = vst.msk [vmem:[#allocation3] sm:$0x1] %vm430_vm1, %v1994_v0 }
  0x2e PF: > { %v2145_v1 = vld [vmem:[%s2126_s10 + $0x8] sm:$0xff]  ;;  %v2148_v2 = vld [vmem:[%s2126_s10] sm:$0xff]  ;;  %v537_v7 = vld [vmem:[%s2901_s3 + $0x78] sm:$0xff]  ;;  %vm821_vm3 = vcmask 64512   ;;  %p1637_p2 = scmp.ne.s32.totalorder %s1976_s30, 1 }
  0x2f   : > { %v2151_v3 = vld [vmem:[%s2126_s10 + $0x28] sm:$0xff]  ;;  %v443_v4 = vmul.f32 %v2145_v1, %v2145_v1  ;;  %v442_v5 = vmul.f32 %v2148_v2, %v2148_v2  ;;  %v2158_v6 = vld [vmem:[%s2126_s10 + $0x20] sm:$0xff]  ;;  %v536_v10 = vld [vmem:[%s2901_s3 + $0x70] sm:$0xff]  ;;  %1667 = vmatprep.subr.mxu0 %v537_v7  ;;  %1711 = vmatprep.subr.mxu1 %v537_v7 }
  0x30   : > { %v447_v8 = vmul.f32 %v2151_v3, %v2151_v3  ;;  %v446_v9 = vmul.f32 %v2158_v6, %v2158_v6  ;;  %v2171_v11 = vld [vmem:[%s2126_s10 + $0x30] sm:$0xff]  ;;  %1668 = vmatpush3.msra.mxu0 %v537_v7  ;;  %1727 = vmatpush3.msra.mxu1 %v537_v7  ;;  %v535_v13 = vld [vmem:[%s2901_s3 + $0x68] sm:$0xff]  ;;  %v2184_v16 = vld [vmem:[%s2126_s10 + $0x38] sm:$0xff] }
  0x31   : > { %452 = vadd.xlane.f32.xlu1 %v443_v4  ;;  %450 = vadd.xlane.f32.xlu0 %v442_v5  ;;  %v2174_v12 = vld [vmem:[%s2126_s10 + $0x10] sm:$0xff]  ;;  %v448_v14 = vmul.f32 %v2171_v11, %v2171_v11  ;;  %v2187_v17 = vld [vmem:[%s2126_s10 + $0x18] sm:$0xff]  ;;  %v534_v18 = vld [vmem:[%s2901_s3 + $0x60] sm:$0xff]  ;;  %v449_v19 = vmul.f32 %v2184_v16, %v2184_v16 }
  0x32   : > { %1669 = vmatprep.subr.mxu0 %v536_v10  ;;  %1712 = vmatprep.subr.mxu1 %v536_v10  ;;  %v444_v15 = vmul.f32 %v2174_v12, %v2174_v12  ;;  %v445_v20 = vmul.f32 %v2187_v17, %v2187_v17  ;;  %v533_v21 = vld [vmem:[%s2901_s3 + $0x58] sm:$0xff]  ;;  %v532_v22 = vld [vmem:[%s2901_s3 + $0x50] sm:$0xff]  ;;  %v531_v23 = vld [vmem:[%s2901_s3 + $0x48] sm:$0xff] }
  0x33   : > { %1670 = vmatpush3.msra.mxu0 %v536_v10  ;;  %1728 = vmatpush3.msra.mxu1 %v536_v10  ;;  %v530_v24 = vld [vmem:[%s2901_s3 + $0x40] sm:$0xff]  ;;  %v529_v25 = vld [vmem:[%s2901_s3 + $0x38] sm:$0xff]  ;;  %v528_v26 = vld [vmem:[%s2901_s3 + $0x30] sm:$0xff] }
  0x34   : > { %1671 = vmatprep.subr.mxu0 %v535_v13  ;;  %1713 = vmatprep.subr.mxu1 %v535_v13  ;;  %v527_v27 = vld [vmem:[%s2901_s3 + $0x28] sm:$0xff]  ;;  %v526_v28 = vld [vmem:[%s2901_s3 + $0x20] sm:$0xff]  ;;  %v525_v29 = vld [vmem:[%s2901_s3 + $0x18] sm:$0xff] }
  0x35   : > { %460 = vadd.xlane.f32.xlu1 %v447_v8  ;;  %458 = vadd.xlane.f32.xlu0 %v446_v9  ;;  %v524_v30 = vld [vmem:[%s2901_s3 + $0x10] sm:$0xff]  ;;  %v523_v31 = vld [vmem:[%s2901_s3 + $0x8] sm:$0xff]  ;;  %v522_v32 = vld [vmem:[%s2901_s3] sm:$0xff] }
  0x36   : > { %1672 = vmatpush3.msra.mxu0 %v535_v13  ;;  %1729 = vmatpush3.msra.mxu1 %v535_v13 }
  0x37   : > { %1673 = vmatprep.subr.mxu0 %v534_v18  ;;  %1714 = vmatprep.subr.mxu1 %v534_v18 }
  0x38   : > { %1674 = vmatpush3.msra.mxu0 %v534_v18  ;;  %1730 = vmatpush3.msra.mxu1 %v534_v18 }
  0x39   : > { %462 = vadd.xlane.f32.xlu1 %v448_v14  ;;  %454 = vadd.xlane.f32.xlu0 %v444_v15 }
  0x3a   : > { %1675 = vmatprep.subr.mxu0 %v533_v21  ;;  %1715 = vmatprep.subr.mxu1 %v533_v21 }
  0x3b   : > { %1676 = vmatpush3.msra.mxu0 %v533_v21  ;;  %1731 = vmatpush3.msra.mxu1 %v533_v21 }
  0x3c   : > { %1677 = vmatprep.subr.mxu0 %v532_v22  ;;  %1716 = vmatprep.subr.mxu1 %v532_v22 }
  0x3d   : > { %464 = vadd.xlane.f32.xlu1 %v449_v19  ;;  %456 = vadd.xlane.f32.xlu0 %v445_v20  ;;  %v1636_v19 = vld [vmem:[%s2902_s4] ss:$0 sm:$0xff] }
  0x3e   : > { %1678 = vmatpush3.msra.mxu0 %v532_v22  ;;  %1732 = vmatpush3.msra.mxu1 %v532_v22 }
  0x3f   : > { %1679 = vmatprep.subr.mxu0 %v531_v23  ;;  %1717 = vmatprep.subr.mxu1 %v531_v23 }
  0x40   : > { %1680 = vmatpush3.msra.mxu0 %v531_v23  ;;  %1733 = vmatpush3.msra.mxu1 %v531_v23 }
  0x41   : > { %1681 = vmatprep.subr.mxu0 %v530_v24  ;;  %1718 = vmatprep.subr.mxu1 %v530_v24 }
  0x42   : > { %1682 = vmatpush3.msra.mxu0 %v530_v24  ;;  %1734 = vmatpush3.msra.mxu1 %v530_v24 }
  0x43   : > { %1683 = vmatprep.subr.mxu0 %v529_v25  ;;  %1719 = vmatprep.subr.mxu1 %v529_v25 }
  0x44   : > { %1684 = vmatpush3.msra.mxu0 %v529_v25  ;;  %1735 = vmatpush3.msra.mxu1 %v529_v25 }
  0x45   : > { %1685 = vmatprep.subr.mxu0 %v528_v26  ;;  %1720 = vmatprep.subr.mxu1 %v528_v26 }
  0x46   : > { %1686 = vmatpush3.msra.mxu0 %v528_v26  ;;  %1736 = vmatpush3.msra.mxu1 %v528_v26 }
  0x47   : > { %1687 = vmatprep.subr.mxu0 %v527_v27  ;;  %1721 = vmatprep.subr.mxu1 %v527_v27 }
  0x48   : > { %1688 = vmatpush3.msra.mxu0 %v527_v27  ;;  %1737 = vmatpush3.msra.mxu1 %v527_v27 }
  0x49   : > { %1689 = vmatprep.subr.mxu0 %v526_v28  ;;  %1722 = vmatprep.subr.mxu1 %v526_v28 }
  0x4a   : > { %1690 = vmatpush3.msra.mxu0 %v526_v28  ;;  %1738 = vmatpush3.msra.mxu1 %v526_v28 }
  0x4b   : > { %1691 = vmatprep.subr.mxu0 %v525_v29  ;;  %1723 = vmatprep.subr.mxu1 %v525_v29 }
  0x4c   : > { %1692 = vmatpush3.msra.mxu0 %v525_v29  ;;  %1739 = vmatpush3.msra.mxu1 %v525_v29 }
  0x4d   : > { %1693 = vmatprep.subr.mxu0 %v524_v30  ;;  %1724 = vmatprep.subr.mxu1 %v524_v30 }
  0x4e   : > { %1694 = vmatpush3.msra.mxu0 %v524_v30  ;;  %1740 = vmatpush3.msra.mxu1 %v524_v30 }
  0x4f   : > { %1695 = vmatprep.subr.mxu0 %v523_v31  ;;  %1725 = vmatprep.subr.mxu1 %v523_v31 }
  0x50   : > { %1696 = vmatpush3.msra.mxu0 %v523_v31  ;;  %1741 = vmatpush3.msra.mxu1 %v523_v31 }
  0x51   : > { %1697 = vmatprep.subr.mxu0 %v522_v32  ;;  %1726 = vmatprep.subr.mxu1 %v522_v32 }
  0x52   : > { %1698 = vmatpush3.msra.mxu0 %v522_v32  ;;  %1742 = vmatpush3.msra.mxu1 %v522_v32 }
  0xba   : > { %v453_v33 = vpop.xlane.xlu1 %452  ;;  %v451_v34 = vpop.xlane.xlu0 %450 }
  0xbb   : > { %v467_v35 = vmax.f32 %v453_v33, 1e-24  ;;  %v466_v36 = vmax.f32 %v451_v34, 1e-24 }
  0xbd   : > { %1822 = vrsqrt.f32 %v467_v35 }
  0xbe   : > { %1824 = vrsqrt.f32 %v466_v36  ;;  %v461_v37 = vpop.xlane.xlu1 %460  ;;  %v459_v38 = vpop.xlane.xlu0 %458 }
  0xbf   : > { %v471_v39 = vmax.f32 %v461_v37, 1e-24  ;;  %v470_v40 = vmax.f32 %v459_v38, 1e-24 }
  0xc1   : > { %1826 = vrsqrt.f32 %v471_v39 }
  0xc2   : > { %1828 = vrsqrt.f32 %v470_v40  ;;  %v463_v41 = vpop.xlane.xlu1 %462  ;;  %v455_v42 = vpop.xlane.xlu0 %454 }
  0xc3   : > { %v472_v43 = vmax.f32 %v463_v41, 1e-24  ;;  %v468_v44 = vmax.f32 %v455_v42, 1e-24 }
  0xc5   : > { %1830 = vrsqrt.f32 %v472_v43 }
  0xc6   : > { %1832 = vrsqrt.f32 %v468_v44  ;;  %v465_v45 = vpop.xlane.xlu1 %464  ;;  %v457_v46 = vpop.xlane.xlu0 %456 }
  0xc7   : > { %v473_v47 = vmax.f32 %v465_v45, 1e-24  ;;  %v469_v48 = vmax.f32 %v457_v46, 1e-24 }
  0xc9   : > { %1834 = vrsqrt.f32 %v473_v47 }
  0xca   : > { %v1823_v49 = vpop.eup %1822  ;;  %1836 = vrsqrt.f32 %v469_v48 }
  0xcb   : > { %v1825_v50 = vpop.eup %1824  ;;  %v491_v51 = vmul.f32 %v1823_v49, %v453_v33  ;;  %v2233_v52 = vmul.f32 %v1823_v49, %v2145_v1 }
  0xcc   : > { %v490_v53 = vmul.f32 %v1825_v50, %v451_v34  ;;  %v2236_v54 = vmul.f32 %v1825_v50, %v2148_v2 }
  0xcd   : > { %v499_v55 = vmul.f32 %v1823_v49, %v491_v51 }
  0xce   : > { %v1827_v56 = vpop.eup %1826  ;;  %v498_v57 = vmul.f32 %v1825_v50, %v490_v53  ;;  %1699 = vmatprep.mubr.f32.mxu0 %v2236_v54 }
  0xcf   : > { %v1829_v58 = vpop.eup %1828  ;;  %v495_v59 = vmul.f32 %v1827_v56, %v461_v37  ;;  %1700 = vmatmul.mubr.f32.vlgmr.msra.gmra.mxu0 %v2233_v52  ;;  %v2241_v60 = vmul.f32 %v1827_v56, %v2151_v3  ;;  %v652_v23 = vadd.f32 %v1636_v19, %v499_v55 }
  0xd0   : > { %v494_v61 = vmul.f32 %v1829_v58, %v459_v38  ;;  %v2244_v62 = vmul.f32 %v1829_v58, %v2158_v6  ;;  %v651_v31 = vadd.f32 %v1636_v19, %v498_v57 }
  0xd1   : > { %v503_v63 = vmul.f32 %v1827_v56, %v495_v59 }
  0xd2   : > { %v1831_v0 = vpop.eup %1830  ;;  %v502_v1 = vmul.f32 %v1829_v58, %v494_v61  ;;  %1705 = vmatprep.mubr.f32.mxu1 %v2244_v62 }
  0xd3   : > { %v1833_v2 = vpop.eup %1832  ;;  %v496_v4 = vmul.f32 %v1831_v0, %v463_v41  ;;  %1706 = vmatmul.mubr.f32.vlgmr.msra.gmra.mxu1 %v2241_v60  ;;  %v2249_v5 = vmul.f32 %v1831_v0, %v2171_v11  ;;  %v683_v11 = vlaneseq  ;;  %v656_v32 = vadd.f32 %v1636_v19, %v503_v63 }
  0xd4   : > { %v492_v7 = vmul.f32 %v1833_v2, %v455_v42  ;;  %v2252_v3 = vmul.f32 %v1833_v2, %v2174_v12  ;;  %v655_v33 = vadd.f32 %v1636_v19, %v502_v1 }
  0xd5   : > { %v504_v8 = vmul.f32 %v1831_v0, %v496_v4  ;;  %1708 = vmatprep.mubr.f32.mxu1 %v2249_v5  ;;  %v2264_v12 = vshrl.u32 %v683_v11, 7  ;;  %v2276_v24 = vand.u32 127, %v683_v11 }
  0xd6   : > { %v1835_v6 = vpop.eup %1834  ;;  %v500_v9 = vmul.f32 %v1833_v2, %v492_v7  ;;  %1702 = vmatprep.mubr.f32.mxu0 %v2252_v3 }
  0xd7   : > { %v1837_v10 = vpop.eup %1836  ;;  %v2257_v13 = vmul.f32 %v1835_v6, %v2184_v16  ;;  %v497_v15 = vmul.f32 %v1835_v6, %v465_v45  ;;  %v687_v20 = vadd.s32 8, %v2264_v12  ;;  %v2273_v16 = vld [vmem:[%s2903_s5] sm:$0x1]  ;;  %v690_v27 = vadd.s32 32, %v2264_v12 }
  0xd8   : > { %v2260_v14 = vmul.f32 %v1837_v10, %v2187_v17  ;;  %v493_v18 = vmul.f32 %v1837_v10, %v457_v46  ;;  %v691_v17 = vadd.s32 40, %v2264_v12  ;;  %v798_v28 = vmul.f32 2e-06, %v2273_v16 }
  0xd9   : > { %1709 = vmatmul.mubr.f32.gmra.mxu1 %v2257_v13  ;;  %v505_v21 = vmul.f32 %v1835_v6, %v497_v15  ;;  %v705_v26 = vand.u32 7, %v687_v20  ;;  %v2281_v29 = vsub.s32 0, %v2264_v12  ;;  %v698_v35 = vand.u32 7, %v2264_v12 }
  0xda   : > { %1703 = vmatmul.mubr.f32.gmra.mxu0 %v2260_v14  ;;  %v501_v22 = vmul.f32 %v1837_v10, %v493_v18  ;;  %v733_v36 = vand.u32 7, %v691_v17  ;;  %v2284_v37 = vadd.f32 %v1636_v19, %v504_v8  ;;  %v689_v38 = vadd.s32 24, %v2264_v12 }
  0xdb   : > { %v658_v41 = vadd.f32 %v1636_v19, %v505_v21  ;;  %v2287_v42 = vadd.f32 %v1636_v19, %v500_v9  ;;  %vm2290_vm2 = vcmp.eq.s32.totalorder %v2276_v24, %v705_v26  ;;  %v726_v46 = vand.u32 7, %v690_v27 }
  0xdc   : > { %v654_v45 = vadd.f32 %v1636_v19, %v501_v22  ;;  %v2295_v47 = vrot.slane %v798_v28, %v2281_v29  ;;  %vm2298_vm4 = vcmp.eq.s32.totalorder %v2276_v24, %v698_v35  ;;  %vm2303_vm5 = vcmp.eq.s32.totalorder %v2276_v24, %v733_v36 }
  0xdd   : > { %v719_v56 = vand.u32 7, %v689_v38  ;;  %v693_v57 = vadd.s32 56, %v2264_v12  ;;  %vm2315_vm6 = vcmp.eq.s32.totalorder %v2276_v24, %v726_v46  ;;  %v688_v2 = vadd.s32 16, %v2264_v12 }
  0xde   : > { %v692_v18 = vadd.s32 48, %v2264_v12 }
  0xdf   : > { %v747_v15 = vand.u32 7, %v693_v57  ;;  %vm2336_vm7 = vcmp.eq.s32.totalorder %v2276_v24, %v719_v56  ;;  %v712_v35 = vand.u32 7, %v688_v2 }
  0xe1   : > { %vm797_vm8 = vcmp.eq.s32.totalorder %v2276_v24, %v747_v15  ;;  %vm2358_vm9 = vcmp.eq.s32.totalorder %v2276_v24, %v712_v35 }
 0x18f   : > { %v1701_v25 = vpop.f32.mrf.mxu0 }
 0x190   : > { %v660_v30 = vmul.f32 2.0, %v1701_v25 }
 0x191   : > { %v606_v34 = vpop.f32.mrf.mxu0 }
 0x192   : > { %v668_v39 = vsub.f32 %v652_v23, %v660_v30  ;;  %v659_v40 = vmul.f32 2.0, %v606_v34 }
 0x193   : > { %v1707_v43 = vpop.f32.mrf.mxu1 }
 0x194   : > { %v676_v48 = vmax.f32 %v668_v39, 0.0  ;;  %v667_v49 = vsub.f32 %v651_v31, %v659_v40  ;;  %v664_v50 = vmul.f32 2.0, %v1707_v43 }
 0x195   : > { %v626_v51 = vpop.f32.mrf.mxu1 }
 0x196   : > { %v675_v58 = vmax.f32 %v667_v49, 0.0  ;;  %v672_v59 = vsub.f32 %v656_v32, %v664_v50  ;;  %v663_v61 = vmul.f32 2.0, %v626_v51  ;;  %v2310_v63 = vsel %vm2290_vm2, inf, %v676_v48 }
 0x197   : > { %v857_v0 = vsel %vm821_vm3, %v2310_v63, inf  ;;  %v806_v4 = vsub.f32 %v676_v48, %v2295_v47 }
 0x198   : > { %v680_v7 = vmax.f32 %v672_v59, 0.0  ;;  %v671_v8 = vsub.f32 %v655_v33, %v663_v61  ;;  %858 = vmin.xlane.f32.xlu1 %v857_v0  ;;  %v2323_v6 = vsel %vm2298_vm4, inf, %v675_v58  ;;  %v805_v9 = vsub.f32 %v675_v58, %v2295_v47 }
 0x199   : > { %v854_v10 = vsel %vm821_vm3, %v2323_v6, inf  ;;  %v1710_v11 = vpop.f32.mrf.mxu1  ;;  %v2331_v19 = vsel %vm2290_vm2, %v806_v4, 0.0 }
 0x19a   : > { %v679_v20 = vmax.f32 %v671_v8, 0.0  ;;  %855 = vmin.xlane.f32.xlu0 %v854_v10  ;;  %v1704_v17 = vpop.f32.mrf.mxu0  ;;  %v666_v21 = vmul.f32 2.0, %v1710_v11  ;;  %v851_v22 = vsel %vm2303_vm5, inf, %v680_v7  ;;  %v2343_v28 = vsel %vm2298_vm4, %v805_v9, 0.0 }
 0x19b   : > { %v662_v25 = vmul.f32 2.0, %v1704_v17  ;;  %v869_v26 = vsel %vm821_vm3, %v851_v22, inf  ;;  %v636_v27 = vpop.f32.mrf.mxu1  ;;  %v810_v30 = vsub.f32 %v680_v7, %v2295_v47 }
 0x19c   : > { %v674_v31 = vsub.f32 %v658_v41, %v666_v21  ;;  %870 = vmin.xlane.f32.xlu1 %v869_v26  ;;  %v616_v32 = vpop.f32.mrf.mxu0  ;;  %v665_v33 = vmul.f32 2.0, %v636_v27  ;;  %v850_v34 = vsel %vm2315_vm6, inf, %v679_v20  ;;  %v740_v41 = vand.u32 7, %v692_v18 }
 0x19d   : > { %v670_v36 = vsub.f32 %v654_v45, %v662_v25  ;;  %v661_v38 = vmul.f32 2.0, %v616_v32  ;;  %v866_v39 = vsel %vm821_vm3, %v850_v34, inf  ;;  %v2351_v40 = vsel %vm2303_vm5, %v810_v30, 0.0 }
 0x19e   : > { %v682_v43 = vmax.f32 %v674_v31, 0.0  ;;  %v673_v44 = vsub.f32 %v2284_v37, %v665_v33  ;;  %867 = vmin.xlane.f32.xlu0 %v866_v39  ;;  %v809_v46 = vsub.f32 %v679_v20, %v2295_v47  ;;  %vm796_vm10 = vcmp.eq.s32.totalorder %v2276_v24, %v740_v41 }
 0x19f   : > { %v678_v48 = vmax.f32 %v670_v36, 0.0  ;;  %v669_v49 = vsub.f32 %v2287_v42, %v661_v38 }
 0x1a0   : > { %v681_v45 = vmax.f32 %v673_v44, 0.0  ;;  %v2364_v51 = vsel %vm2315_vm6, %v809_v46, 0.0  ;;  %v812_v37 = vsub.f32 %v682_v43, %v2295_v47  ;;  %v853_v59 = vsel %vm797_vm8, inf, %v682_v43 }
 0x1a1   : > { %v677_v53 = vmax.f32 %v669_v49, 0.0  ;;  %v849_v55 = vsel %vm2336_vm7, inf, %v678_v48  ;;  %v808_v42 = vsub.f32 %v678_v48, %v2295_v47  ;;  %v875_v8 = vsel %vm821_vm3, %v853_v59, inf }
 0x1a2   : > { %v863_v56 = vsel %vm821_vm3, %v849_v55, inf  ;;  %v2372_v57 = vsel %vm797_vm8, %v812_v37, 0.0  ;;  %v811_v2 = vsub.f32 %v681_v45, %v2295_v47  ;;  %v852_v4 = vsel %vm796_vm10, inf, %v681_v45 }
 0x1a3   : > { %864 = vmin.xlane.f32.xlu1 %v863_v56  ;;  %v848_v58 = vsel %vm2358_vm9, inf, %v677_v53  ;;  %v2378_v61 = vsel %vm2336_vm7, %v808_v42, 0.0  ;;  %v807_v0 = vsub.f32 %v677_v53, %v2295_v47  ;;  %v872_v10 = vsel %vm821_vm3, %v852_v4, inf }
 0x1a4   : > { %v860_v1 = vsel %vm821_vm3, %v848_v58, inf  ;;  %v2388_v9 = vsel %vm796_vm10, %v811_v2, 0.0 }
 0x1a5   : > { %861 = vmin.xlane.f32.xlu0 %v860_v1  ;;  %v2385_v7 = vsel %vm2358_vm9, %v807_v0, 0.0 }
 0x1a7   : > { %876 = vmin.xlane.f32.xlu1 %v875_v8 }
 0x1a9   : > { %873 = vmin.xlane.f32.xlu0 %v872_v10 }
 0x221   : > { %v2391_v11 = vpop.xlane.xlu1 %858 }
 0x222   : > { %vm879_vm11 = vcmp.le.f32.partialorder %v2310_v63, %v2391_v11 }
 0x223   : > { %v2396_v47 = vsel %vm879_vm11, %v2276_v24, 8  ;;  %v2398_v15 = vpop.xlane.xlu0 %855 }
 0x224   : > { %vm878_vm12 = vcmp.le.f32.partialorder %v2323_v6, %v2398_v15  ;;  %v909_v18 = vsel %vm821_vm3, %v2396_v47, 2147483647 }
 0x225   : > { %v2405_v20 = vsel %vm878_vm12, %v2276_v24, 8  ;;  %v2407_v17 = vpop.xlane.xlu1 %870  ;;  %v911_v21 = vshra.s32 %v909_v18, 16  ;;  %v910_v2 = vand.u32 65535, %v909_v18  ;;  %vm1318_vm12 = vcmask 57344  }
 0x226   : > { %vm883_vm13 = vcmp.le.f32.partialorder %v851_v22, %v2407_v17  ;;  %v894_v63 = vsel %vm821_vm3, %v2405_v20, 2147483647 }
 0x227   : > { %v2413_v23 = vsel %vm883_vm13, %v2276_v24, 8  ;;  %v2415_v25 = vpop.xlane.xlu0 %867  ;;  %v913_v6 = vcvt.s32.f32 %v911_v21  ;;  %v896_v26 = vshra.s32 %v894_v63, 16  ;;  %v912_v10 = vcvt.s32.f32 %v910_v2 }
 0x228   : > { %vm882_vm14 = vcmp.le.f32.partialorder %v850_v34, %v2415_v25  ;;  %v969_v27 = vsel %vm821_vm3, %v2413_v23, 2147483647 }
 0x229   : > { %v2421_v30 = vsel %vm882_vm14, %v2276_v24, 8  ;;  %914 = vmin.xlane.f32.xlu1 %v913_v6  ;;  %v898_v22 = vcvt.s32.f32 %v896_v26  ;;  %v971_v31 = vshra.s32 %v969_v27, 16  ;;  %v970_v21 = vand.u32 65535, %v969_v27 }
 0x22a   : > { %v954_v32 = vsel %vm821_vm3, %v2421_v30, 2147483647 }
 0x22b   : > { %899 = vmin.xlane.f32.xlu0 %v898_v22  ;;  %v973_v33 = vcvt.s32.f32 %v971_v31  ;;  %v956_v35 = vshra.s32 %v954_v32, 16 }
 0x22c   : > { %v2425_v36 = vpop.xlane.xlu1 %864 }
 0x22d   : > { %vm881_vm15 = vcmp.le.f32.partialorder %v849_v55, %v2425_v36  ;;  %974 = vmin.xlane.f32.xlu1 %v973_v33  ;;  %v958_v34 = vcvt.s32.f32 %v956_v35  ;;  %v955_v35 = vand.u32 65535, %v954_v32 }
 0x22e   : > { %v2429_v38 = vsel %vm881_vm15, %v2276_v24, 8  ;;  %v2431_v39 = vpop.xlane.xlu0 %861 }
 0x22f   : > { %vm880_vm0 = vcmp.le.f32.partialorder %v848_v58, %v2431_v39  ;;  %959 = vmin.xlane.f32.xlu0 %v958_v34  ;;  %v939_v43 = vsel %vm821_vm3, %v2429_v38, 2147483647  ;;  %v957_v27 = vcvt.s32.f32 %v955_v35 }
 0x230   : > { %v2437_v44 = vsel %vm880_vm0, %v2276_v24, 8  ;;  %v2439_v41 = vpop.xlane.xlu1 %876  ;;  %v941_v46 = vshra.s32 %v939_v43, 16 }
 0x231   : > { %vm885_vm1 = vcmp.le.f32.partialorder %v853_v59, %v2439_v41  ;;  %v924_v48 = vsel %vm821_vm3, %v2437_v44, 2147483647 }
 0x232   : > { %v2445_v49 = vsel %vm885_vm1, %v2276_v24, 8  ;;  %v2447_v45 = vpop.xlane.xlu0 %873  ;;  %v943_v50 = vcvt.s32.f32 %v941_v46  ;;  %v926_v37 = vshra.s32 %v924_v48, 16  ;;  %v925_v32 = vand.u32 65535, %v924_v48 }
 0x233   : > { %vm884_vm2 = vcmp.le.f32.partialorder %v852_v4, %v2447_v45  ;;  %v999_v53 = vsel %vm821_vm3, %v2445_v49, 2147483647  ;;  %v895_v4 = vand.u32 65535, %v894_v63 }
 0x234   : > { %v2453_v55 = vsel %vm884_vm2, %v2276_v24, 8  ;;  %944 = vmin.xlane.f32.xlu1 %v943_v50  ;;  %v928_v42 = vcvt.s32.f32 %v926_v37  ;;  %v1001_v56 = vshra.s32 %v999_v53, 16 }
 0x235   : > { %v984_v58 = vsel %vm821_vm3, %v2453_v55, 2147483647  ;;  %v897_v31 = vcvt.s32.f32 %v895_v4  ;;  %v1000_v4 = vand.u32 65535, %v999_v53 }
 0x236   : > { %929 = vmin.xlane.f32.xlu0 %v928_v42  ;;  %v1003_v59 = vcvt.s32.f32 %v1001_v56  ;;  %v986_v0 = vshra.s32 %v984_v58, 16  ;;  %v972_v56 = vcvt.s32.f32 %v970_v21  ;;  %v927_v21 = vcvt.s32.f32 %v925_v32 }
 0x238   : > { %1004 = vmin.xlane.f32.xlu1 %v1003_v59  ;;  %v988_v1 = vcvt.s32.f32 %v986_v0 }
 0x23a   : > { %989 = vmin.xlane.f32.xlu0 %v988_v1 }
 0x2b2   : > { %v2457_v8 = vpop.xlane.xlu1 %914 }
 0x2b3   : > { %vm916_vm4 = vcmp.eq.f32.partialorder %v913_v6, %v2457_v8  ;;  %v940_v6 = vand.u32 65535, %v939_v43  ;;  %v1002_v43 = vcvt.s32.f32 %v1000_v4 }
 0x2b4   : > { %v2460_v24 = vpop.xlane.xlu0 %899  ;;  %v917_v26 = vsel %vm916_vm4, %v912_v10, inf }
 0x2b5   : > { %918 = vmin.xlane.f32.xlu1 %v917_v26  ;;  %vm901_vm5 = vcmp.eq.f32.partialorder %v898_v22, %v2460_v24  ;;  %v942_v22 = vcvt.s32.f32 %v940_v6  ;;  %v985_v26 = vand.u32 65535, %v984_v58  ;;  %v822_v58 = vsel %vm821_vm3, %v2343_v28, 0.0 }
 0x2b6   : > { %v2463_v46 = vpop.xlane.xlu1 %974  ;;  %v902_v37 = vsel %vm901_vm5, %v897_v31, inf }
 0x2b7   : > { %903 = vmin.xlane.f32.xlu0 %v902_v37  ;;  %vm976_vm6 = vcmp.eq.f32.partialorder %v973_v33, %v2463_v46  ;;  %v987_v35 = vcvt.s32.f32 %v985_v26  ;;  %v837_v37 = vsel %vm821_vm3, %v2351_v40, 0.0  ;;  %v921_v40 = vcvt.f32.s32 %v2457_v8 }
 0x2b8   : > { %v2466_v18 = vpop.xlane.xlu0 %959  ;;  %v977_v63 = vsel %vm976_vm6, %v972_v56, inf  ;;  %v2502_v56 = vld [vmem:[%s2121_s16] sm:$0xff] }
 0x2b9   : > { %978 = vmin.xlane.f32.xlu1 %v977_v63  ;;  %vm961_vm7 = vcmp.eq.f32.partialorder %v958_v34, %v2466_v18  ;;  %v1310_v28 = vsel %vm821_vm3, %v2502_v56, 0.0 }
 0x2ba   : > { %v962_v0 = vsel %vm961_vm7, %v957_v27, inf  ;;  %v1311_v63 = vrot.slane %v1310_v28, 4 }
 0x2bb   : > { %963 = vmin.xlane.f32.xlu0 %v962_v0 }
 0x2bd   : > { %v2469_v2 = vpop.xlane.xlu1 %944 }
 0x2be   : > { %vm946_vm8 = vcmp.eq.f32.partialorder %v943_v50, %v2469_v2 }
 0x2bf   : > { %v2472_v10 = vpop.xlane.xlu0 %929  ;;  %v947_v33 = vsel %vm946_vm8, %v942_v22, inf }
 0x2c0   : > { %948 = vmin.xlane.f32.xlu1 %v947_v33  ;;  %vm931_vm9 = vcmp.eq.f32.partialorder %v928_v42, %v2472_v10  ;;  %v825_v42 = vsel %vm821_vm3, %v2331_v19, 0.0  ;;  %v834_v19 = vsel %vm821_vm3, %v2364_v51, 0.0  ;;  %v906_v51 = vcvt.f32.s32 %v2460_v24 }
 0x2c1   : > { %v2475_v31 = vpop.xlane.xlu1 %1004  ;;  %v932_v34 = vsel %vm931_vm9, %v927_v21, inf  ;;  %v922_v33 = vshll.u32 %v921_v40, 16  ;;  %v981_v21 = vcvt.f32.s32 %v2463_v46 }
 0x2c2   : > { %933 = vmin.xlane.f32.xlu0 %v932_v34  ;;  %vm1006_vm10 = vcmp.eq.f32.partialorder %v1003_v59, %v2475_v31  ;;  %v831_v59 = vsel %vm821_vm3, %v2378_v61, 0.0  ;;  %v1312_v61 = vadd.f32 %v1311_v63, %v1310_v28  ;;  %v966_v34 = vcvt.f32.s32 %v2466_v18 }
 0x2c3   : > { %v2478_v48 = vpop.xlane.xlu0 %989  ;;  %v1007_v53 = vsel %vm1006_vm10, %v1002_v43, inf }
 0x2c4   : > { %1008 = vmin.xlane.f32.xlu1 %v1007_v53  ;;  %vm991_vm11 = vcmp.eq.f32.partialorder %v988_v1, %v2478_v48  ;;  %v828_v1 = vsel %vm821_vm3, %v2385_v7, 0.0  ;;  %v1313_v27 = vrot.slane %v1312_v61, 2  ;;  %v1309_v7 = vld [vmem:[#allocation3] sm:$0x1]  ;;  %v1026_v53 = vrot.slane %v2273_v16, %v2281_v29 }
 0x2c5   : > { %v992_v50 = vsel %vm991_vm11, %v987_v35, inf  ;;  %v907_v35 = vshll.u32 %v906_v51, 16  ;;  %v967_v24 = vshll.u32 %v966_v34, 16  ;;  %v951_v16 = vcvt.f32.s32 %v2469_v2 }
 0x2c6   : > { %993 = vmin.xlane.f32.xlu0 %v992_v50  ;;  %v1314_v6 = vadd.f32 %v1313_v27, %v1312_v61  ;;  %v996_v40 = vcvt.f32.s32 %v2478_v48 }
 0x2c8   : > { %508 = vadd.xlane.f32.xlu1 %v2233_v52  ;;  %v1315_v0 = vrot.slane %v1314_v6, 1 }
 0x2ca   : > { %506 = vadd.xlane.f32.xlu0 %v2236_v54  ;;  %v1316_v32 = vadd.f32 %v1315_v0, %v1314_v6 }
 0x2cc   : > { %512 = vadd.xlane.f32.xlu1 %v2260_v14  ;;  %v1317_v22 = vadd.f32 %v1316_v32, %v1309_v7  ;;  %v952_v32 = vshll.u32 %v951_v16, 16  ;;  %v1358_v16 = vsub.s32 5, %v2264_v12 }
 0x2ce   : > { %510 = vadd.xlane.f32.xlu0 %v2252_v3  ;;  %1319 = vst.msk [vmem:[#allocation3] sm:$0x1] %vm1318_vm12, %v1317_v22 }
 0x2d0   : > { %516 = vadd.xlane.f32.xlu1 %v2241_v60 }
 0x2d2   : > { %514 = vadd.xlane.f32.xlu0 %v2244_v62 }
 0x2d4   : > { %520 = vadd.xlane.f32.xlu1 %v2257_v13 }
 0x2d6   : > { %518 = vadd.xlane.f32.xlu0 %v2249_v5 }
 0x2d8   : > { %826 = vadd.xlane.f32.xlu1 %v825_v42 }
 0x2da   : > { %823 = vadd.xlane.f32.xlu0 %v822_v58 }
 0x2dc   : > { %832 = vadd.xlane.f32.xlu1 %v831_v59  ;;  %v982_v59 = vshll.u32 %v981_v21, 16 }
 0x2de   : > { %829 = vadd.xlane.f32.xlu0 %v828_v1 }
 0x2e0   : > { %838 = vadd.xlane.f32.xlu1 %v837_v37 }
 0x2e2   : > { %835 = vadd.xlane.f32.xlu0 %v834_v19 }
 0x33e   : > { %v919_v4 = vpop.xlane.xlu1 %918 }
 0x33f   : > { %v920_v26 = vcvt.f32.s32 %v919_v4 }
 0x340   : > { %v904_v43 = vpop.xlane.xlu0 %903 }
 0x341   : > { %v923_v50 = vadd.s32 %v922_v33, %v920_v26  ;;  %v905_v42 = vcvt.f32.s32 %v904_v43 }
 0x342   : > { %v979_v58 = vpop.xlane.xlu1 %978 }
 0x343   : > { %v908_v1 = vadd.s32 %v907_v35, %v905_v42  ;;  %v980_v8 = vcvt.f32.s32 %v979_v58  ;;  %vm1015_vm13 = vcmp.eq.s32.totalorder %v2396_v47, %v923_v50  ;;  %v936_v47 = vcvt.f32.s32 %v2472_v10 }
 0x344   : > { %v964_v37 = vpop.xlane.xlu0 %963  ;;  %v1029_v19 = vsel %vm1015_vm13, %v1026_v53, 0.0 }
 0x345   : > { %v983_v46 = vadd.s32 %v982_v59, %v980_v8  ;;  %v965_v28 = vcvt.f32.s32 %v964_v37  ;;  %v1039_v18 = vsel %vm821_vm3, %v1029_v19, 0.0  ;;  %vm1014_vm14 = vcmp.eq.s32.totalorder %v2405_v20, %v908_v1 }
 0x346   : > { %1040 = vadd.xlane.f32.xlu1 %v1039_v18  ;;  %v1028_v63 = vsel %vm1014_vm14, %v1026_v53, 0.0  ;;  %v1011_v20 = vcvt.f32.s32 %v2475_v31  ;;  %v937_v4 = vshll.u32 %v936_v47, 16  ;;  %v840_v19 = vsel %vm821_vm3, %v2388_v9, 0.0 }
 0x347   : > { %v968_v61 = vadd.s32 %v967_v24, %v965_v28  ;;  %v1036_v27 = vsel %vm821_vm3, %v1028_v63, 0.0  ;;  %vm1019_vm15 = vcmp.eq.s32.totalorder %v2413_v23, %v983_v46  ;;  %v1337_v28 = vsub.s32 2, %v2264_v12 }
 0x348   : > { %1037 = vadd.xlane.f32.xlu0 %v1036_v27  ;;  %v1033_v6 = vsel %vm1019_vm15, %v1026_v53, 0.0  ;;  %v1012_v26 = vshll.u32 %v1011_v20, 16  ;;  %v1324_v18 = vrot.slane %v2502_v56, %v2281_v29  ;;  %v1359_v27 = vrot.slane %v2502_v56, %v1358_v16 }
 0x349   : > { %v949_v0 = vpop.xlane.xlu1 %948  ;;  %v1051_v7 = vsel %vm821_vm3, %v1033_v6, 0.0  ;;  %vm1018_vm0 = vcmp.eq.s32.totalorder %v2421_v30, %v968_v61  ;;  %v997_v30 = vshll.u32 %v996_v40, 16  ;;  %v1365_v61 = vsub.s32 6, %v2264_v12 }
 0x34a   : > { %v950_v2 = vcvt.f32.s32 %v949_v0  ;;  %1052 = vadd.xlane.f32.xlu1 %v1051_v7  ;;  %v1032_v22 = vsel %vm1018_vm0, %v1026_v53, 0.0  ;;  %v1372_v47 = vsub.s32 7, %v2264_v12 }
 0x34b   : > { %v934_v51 = vpop.xlane.xlu0 %933  ;;  %v1048_v23 = vsel %vm821_vm3, %v1032_v22, 0.0  ;;  %v1366_v29 = vrot.slane %v2502_v56, %v1365_v61 }
 0x34c   : > { %v953_v10 = vadd.s32 %v952_v32, %v950_v2  ;;  %v935_v33 = vcvt.f32.s32 %v934_v51  ;;  %1049 = vadd.xlane.f32.xlu0 %v1048_v23  ;;  %v1373_v6 = vrot.slane %v2502_v56, %v1372_v47 }
 0x34d   : > { %v1009_v21 = vpop.xlane.xlu1 %1008 }
 0x34e   : > { %v938_v34 = vadd.s32 %v937_v4, %v935_v33  ;;  %v1010_v43 = vcvt.f32.s32 %v1009_v21  ;;  %vm1017_vm1 = vcmp.eq.s32.totalorder %v2429_v38, %v953_v10 }
 0x34f   : > { %v994_v31 = vpop.xlane.xlu0 %993  ;;  %v1031_v35 = vsel %vm1017_vm1, %v1026_v53, 0.0 }
 0x350   : > { %v1013_v50 = vadd.s32 %v1012_v26, %v1010_v43  ;;  %v995_v42 = vcvt.f32.s32 %v994_v31  ;;  %v1045_v48 = vsel %vm821_vm3, %v1031_v35, 0.0  ;;  %vm1016_vm2 = vcmp.eq.s32.totalorder %v2437_v44, %v938_v34 }
 0x351   : > { %1046 = vadd.xlane.f32.xlu1 %v1045_v48  ;;  %v1030_v58 = vsel %vm1016_vm2, %v1026_v53, 0.0  ;;  %v843_v44 = vsel %vm821_vm3, %v2372_v57, 0.0  ;;  %v1351_v57 = vsub.s32 4, %v2264_v12  ;;  %v509_v0 = vpop.xlane.xlu1 %508 }
 0x352   : > { %v998_v59 = vadd.s32 %v997_v30, %v995_v42  ;;  %v1042_v1 = vsel %vm821_vm3, %v1030_v58, 0.0  ;;  %vm1021_vm4 = vcmp.eq.s32.totalorder %v2445_v49, %v1013_v50  ;;  %v1330_v49 = vsub.s32 1, %v2264_v12 }
 0x353   : > { %1043 = vadd.xlane.f32.xlu0 %v1042_v1  ;;  %v1035_v8 = vsel %vm1021_vm4, %v1026_v53, 0.0  ;;  %v1352_v63 = vrot.slane %v2502_v56, %v1351_v57  ;;  %v507_v7 = vpop.xlane.xlu0 %506 }
 0x354   : > { %v1057_v38 = vsel %vm821_vm3, %v1035_v8, 0.0  ;;  %vm1020_vm5 = vcmp.eq.s32.totalorder %v2453_v55, %v998_v59  ;;  %v1331_v46 = vrot.slane %v2502_v56, %v1330_v49  ;;  %v1338_v55 = vrot.slane %v2502_v56, %v1337_v28 }
 0x355   : > { %1058 = vadd.xlane.f32.xlu1 %v1057_v38  ;;  %v1034_v24 = vsel %vm1020_vm5, %v1026_v53, 0.0  ;;  %v1344_v53 = vsub.s32 3, %v2264_v12  ;;  %v2553_v32 = vpop.xlane.xlu1 %512  ;;  %v1060_v33 = vmul.f32 2e-06, %v507_v7 }
 0x356   : > { %v1054_v37 = vsel %vm821_vm3, %v1034_v24, 0.0  ;;  %v1063_v21 = vmul.f32 2e-06, %v2553_v32 }
 0x357   : > { %1055 = vadd.xlane.f32.xlu0 %v1054_v37  ;;  %v1345_v9 = vrot.slane %v2502_v56, %v1344_v53  ;;  %v2555_v20 = vpop.xlane.xlu0 %510  ;;  %v1061_v56 = vmul.f32 2e-06, %v509_v0 }
 0x358   : > { %v1062_v34 = vmul.f32 2e-06, %v2555_v20 }
 0x359   : > { %844 = vadd.xlane.f32.xlu1 %v843_v44  ;;  %v517_v2 = vpop.xlane.xlu1 %516 }
 0x35a   : > { %v1065_v31 = vmul.f32 2e-06, %v517_v2 }
 0x35b   : > { %841 = vadd.xlane.f32.xlu0 %v840_v19  ;;  %v2557_v22 = vpop.xlane.xlu0 %514 }
 0x35c   : > { %v1064_v42 = vmul.f32 2e-06, %v2557_v22 }
 0x35d   : > { %v2559_v40 = vpop.xlane.xlu1 %520 }
 0x35f   : > { %v2561_v12 = vpop.xlane.xlu0 %518 }
 0x361   : > { %v827_v51 = vpop.xlane.xlu1 %826 }
 0x362   : > { %v1069_v26 = vadd.f32 %v1061_v56, %v827_v51  ;;  %v2586_v51 = vmul.f32 2e-06, %v2559_v40 }
 0x363   : > { %v824_v23 = vpop.xlane.xlu0 %823 }
 0x364   : > { %v1068_v43 = vadd.f32 %v1060_v33, %v824_v23  ;;  %v1077_v58 = vadd.f32 1.28e-10, %v1069_v26 }
 0x365   : > { %v833_v4 = vpop.xlane.xlu1 %832 }
 0x366   : > { %v1071_v35 = vadd.f32 %v1063_v21, %v833_v4  ;;  %v1076_v1 = vadd.f32 1.28e-10, %v1068_v43  ;;  %v2566_v37 = vmax.f32 %v1077_v58, 0.0 }
 0x367   : > { %v830_v10 = vpop.xlane.xlu0 %829 }
 0x368   : > { %v1070_v48 = vadd.f32 %v1062_v34, %v830_v10  ;;  %v1079_v38 = vadd.f32 1.28e-10, %v1071_v35  ;;  %v2568_v19 = vmax.f32 %v1076_v1, 0.0  ;;  %1838 = vrsqrt.f32 %v2566_v37 }
 0x369   : > { %v839_v30 = vpop.xlane.xlu1 %838  ;;  %vm1101_vm3 = vcmp.eq.f32.partialorder %v2566_v37, inf  ;;  %vm1103_vm7 = vcmp.eq.f32.partialorder %v2566_v37, 0.0 }
 0x36a   : > { %1333 = vbcast.lane.b32.xlu1 %v1331_v46, 256  ;;  %v1073_v59 = vadd.f32 %v1065_v31, %v839_v30  ;;  %v1078_v24 = vadd.f32 1.28e-10, %v1070_v48  ;;  %v2570_v46 = vmax.f32 %v1079_v38, 0.0  ;;  %1840 = vrsqrt.f32 %v2568_v19 }
 0x36b   : > { %v836_v50 = vpop.xlane.xlu0 %835  ;;  %vm1094_vm6 = vcmp.eq.f32.partialorder %v2568_v19, inf  ;;  %vm1096_vm10 = vcmp.eq.f32.partialorder %v2568_v19, 0.0 }
 0x36c   : > { %v1072_v8 = vadd.f32 %v1064_v42, %v836_v50  ;;  %v1081_v44 = vadd.f32 1.28e-10, %v1073_v59  ;;  %v2572_v28 = vmax.f32 %v1078_v24, 0.0  ;;  %1842 = vrsqrt.f32 %v2570_v46 }
 0x36d   : > { %vm1115_vm8 = vcmp.eq.f32.partialorder %v2570_v46, inf  ;;  %v1118_v31 = vand.u32 2147483648, %v2570_v46  ;;  %vm1117_vm11 = vcmp.eq.f32.partialorder %v2570_v46, 0.0 }
 0x36e   : > { %1340 = vbcast.lane.b32.xlu1 %v1338_v55, 256  ;;  %v1080_v49 = vadd.f32 1.28e-10, %v1072_v8  ;;  %v2575_v55 = vmax.f32 %v1081_v44, 0.0  ;;  %1844 = vrsqrt.f32 %v2572_v28  ;;  %vm1108_vm9 = vcmp.eq.f32.partialorder %v2572_v28, inf }
 0x36f   : > { %vm1110_vm13 = vcmp.eq.f32.partialorder %v2572_v28, 0.0 }
 0x370   : > { %v2578_v53 = vmax.f32 %v1080_v49, 0.0  ;;  %1846 = vrsqrt.f32 %v2575_v55  ;;  %vm1129_vm14 = vcmp.eq.f32.partialorder %v2575_v55, inf  ;;  %vm1131_vm15 = vcmp.eq.f32.partialorder %v2575_v55, 0.0 }
 0x371   : > { %1326 = vbcast.lane.b32.xlu0 %v1324_v18, 256  ;;  %v1132_v44 = vand.u32 2147483648, %v2575_v55 }
 0x372   : > { %1347 = vbcast.lane.b32.xlu1 %v1345_v9, 256  ;;  %1848 = vrsqrt.f32 %v2578_v53  ;;  %vm1122_vm0 = vcmp.eq.f32.partialorder %v2578_v53, inf  ;;  %vm1124_vm1 = vcmp.eq.f32.partialorder %v2578_v53, 0.0 }
 0x375   : > { %1354 = vbcast.lane.b32.xlu0 %v1352_v63, 256 }
 0x376   : > { %1361 = vbcast.lane.b32.xlu1 %v1359_v27, 256 }
 0x379   : > { %1368 = vbcast.lane.b32.xlu0 %v1366_v29, 256 }
 0x37a   : > { %1375 = vbcast.lane.b32.xlu1 %v1373_v6, 256  ;;  %v1839_v6 = vpop.eup %1838 }
 0x37b   : > { %v1841_v4 = vpop.eup %1840  ;;  %v1100_v50 = vmul.f32 %v1839_v6, %v2566_v37 }
 0x37c   : > { %v1843_v21 = vpop.eup %1842  ;;  %v1093_v8 = vmul.f32 %v1841_v4, %v2568_v19 }
 0x37d   : > { %v1114_v38 = vmul.f32 %v1843_v21, %v2570_v46 }
 0x37f   : > { %v1116_v6 = vsel %vm1115_vm8, %v2570_v46, %v1114_v38  ;;  %vm1300_vm8 = vcmask 7168  }
 0x3cf   : > { %v1041_v18 = vpop.xlane.xlu1 %1040 }
 0x3d0   : > { %v1149_v57 = vsub.f32 %v509_v0, %v1041_v18 }
 0x3d1   : > { %v1038_v9 = vpop.xlane.xlu0 %1037 }
 0x3d2   : > { %v1157_v16 = vmul.f32 2e-06, %v1149_v57  ;;  %v1148_v63 = vsub.f32 %v507_v7, %v1038_v9  ;;  %v2591_v7 = vmul.f32 2e-06, %v2561_v12 }
 0x3d3   : > { %v1053_v61 = vpop.xlane.xlu1 %1052 }
 0x3d4   : > { %v1165_v27 = vadd.f32 %v1157_v16, %v2391_v11  ;;  %v1156_v47 = vmul.f32 2e-06, %v1148_v63  ;;  %v1153_v29 = vsub.f32 %v517_v2, %v1053_v61  ;;  %v1104_v11 = vand.u32 2147483648, %v2566_v37  ;;  %v1845_v2 = vpop.eup %1844 }
 0x3d5   : > { %v1050_v23 = vpop.xlane.xlu0 %1049  ;;  %v1847_v30 = vpop.eup %1846  ;;  %v1107_v24 = vmul.f32 %v1845_v2, %v2572_v28  ;;  %v1102_v61 = vsel %vm1101_vm3, %v2566_v37, %v1100_v50 }
 0x3d6   : > { %v1173_v10 = vadd.f32 1.28e-10, %v1165_v27  ;;  %v1164_v56 = vadd.f32 %v1156_v47, %v2398_v15  ;;  %v1161_v33 = vmul.f32 2e-06, %v1153_v29  ;;  %v1152_v0 = vsub.f32 %v2557_v22, %v1050_v23  ;;  %v1849_v35 = vpop.eup %1848 }
 0x3d7   : > { %v1097_v22 = vand.u32 2147483648, %v2568_v19  ;;  %v1128_v18 = vmul.f32 %v1847_v30, %v2575_v55  ;;  %v1121_v57 = vmul.f32 %v1849_v35, %v2578_v53  ;;  %v1125_v27 = vand.u32 2147483648, %v2578_v53 }
 0x3d8   : > { %v2596_v26 = vmax.f32 %v1173_v10, 0.0  ;;  %v1172_v34 = vadd.f32 1.28e-10, %v1164_v56  ;;  %v1169_v43 = vadd.f32 %v1161_v33, %v2407_v17  ;;  %v1160_v15 = vmul.f32 2e-06, %v1152_v0 }
 0x3d9   : > { %v1111_v17 = vand.u32 2147483648, %v2572_v28  ;;  %v1095_v29 = vsel %vm1094_vm6, %v2568_v19, %v1093_v8  ;;  %v1105_v33 = vsel %vm1103_vm7, %v1104_v11, %v1102_v61  ;;  %v1130_v0 = vsel %vm1129_vm14, %v2575_v55, %v1128_v18 }
 0x3da   : > { %1850 = vrsqrt.f32 %v2596_v26  ;;  %v1047_v42 = vpop.xlane.xlu1 %1046  ;;  %v2611_v48 = vmax.f32 %v1172_v34, 0.0  ;;  %v1177_v58 = vadd.f32 1.28e-10, %v1169_v43  ;;  %v1168_v59 = vadd.f32 %v1160_v15, %v2415_v25 }
 0x3db   : > { %v1151_v1 = vsub.f32 %v2553_v32, %v1047_v42  ;;  %v1123_v21 = vsel %vm1122_vm0, %v2578_v53, %v1121_v57  ;;  %v2657_v43 = vsel %vm1096_vm10, %v1097_v22, %v1095_v29  ;;  %v2672_v19 = vsel %vm1131_vm15, %v1132_v44, %v1130_v0 }
 0x3dc   : > { %v1044_v49 = vpop.xlane.xlu0 %1043  ;;  %1852 = vrsqrt.f32 %v2611_v48  ;;  %v2624_v25 = vmax.f32 %v1177_v58, 0.0  ;;  %v1176_v32 = vadd.f32 1.28e-10, %v1168_v59  ;;  %v2676_v46 = vsel %vm1124_vm1, %v1125_v27, %v1123_v21 }
 0x3dd   : > { %v1159_v9 = vmul.f32 2e-06, %v1151_v1  ;;  %v1150_v16 = vsub.f32 %v2555_v20, %v1044_v49  ;;  %v1109_v20 = vsel %vm1108_vm9, %v2572_v28, %v1107_v24  ;;  %vm1197_vm2 = vcmp.eq.f32.partialorder %v2596_v26, inf }
 0x3de   : > { %v1059_v63 = vpop.xlane.xlu1 %1058  ;;  %1854 = vrsqrt.f32 %v2624_v25  ;;  %v2643_v4 = vmax.f32 %v1176_v32, 0.0  ;;  %v2665_v37 = vsel %vm1110_vm13, %v1111_v17, %v1109_v20  ;;  %vm1199_vm4 = vcmp.eq.f32.partialorder %v2596_v26, 0.0 }
 0x3df   : > { %v1155_v47 = vsub.f32 %v2559_v40, %v1059_v63  ;;  %v1167_v10 = vadd.f32 %v1159_v9, %v2425_v36  ;;  %v1158_v40 = vmul.f32 2e-06, %v1150_v16  ;;  %v2661_v36 = vsel %vm1117_vm11, %v1118_v31, %v1116_v6 }
 0x3e0   : > { %v1056_v23 = vpop.xlane.xlu0 %1055  ;;  %1856 = vrsqrt.f32 %v2643_v4  ;;  %v1200_v55 = vand.u32 2147483648, %v2596_v26  ;;  %vm1190_vm5 = vcmp.eq.f32.partialorder %v2611_v48, inf  ;;  %vm1192_vm3 = vcmp.eq.f32.partialorder %v2611_v48, 0.0 }
 0x3e1   : > { %v1163_v56 = vmul.f32 2e-06, %v1155_v47  ;;  %v1154_v2 = vsub.f32 %v2561_v12, %v1056_v23  ;;  %v1175_v11 = vadd.f32 1.28e-10, %v1167_v10  ;;  %v1166_v15 = vadd.f32 %v1158_v40, %v2431_v39  ;;  %v1277_v23 = vld [vmem:[%s2131_s29 + $0x8] sm:$0xff] }
 0x3e2   : > { %v845_v34 = vpop.xlane.xlu1 %844  ;;  %vm1225_vm6 = vcmp.eq.f32.partialorder %v2624_v25, inf  ;;  %vm1227_vm7 = vcmp.eq.f32.partialorder %v2624_v25, 0.0  ;;  %v1228_v32 = vand.u32 2147483648, %v2624_v25  ;;  %vm1218_vm9 = vcmp.eq.f32.partialorder %v2643_v4, inf }
 0x3e3   : > { %v1171_v12 = vadd.f32 %v1163_v56, %v2439_v41  ;;  %v1162_v30 = vmul.f32 2e-06, %v1154_v2  ;;  %v1075_v28 = vadd.f32 %v2586_v51, %v845_v34  ;;  %v2680_v31 = vmax.f32 %v1175_v11, 0.0  ;;  %v1276_v11 = vld [vmem:[%s2131_s29] sm:$0xff] }
 0x3e4   : > { %v842_v35 = vpop.xlane.xlu0 %841  ;;  %v1174_v50 = vadd.f32 1.28e-10, %v1166_v15  ;;  %v1193_v51 = vand.u32 2147483648, %v2611_v48  ;;  %vm1220_vm10 = vcmp.eq.f32.partialorder %v2643_v4, 0.0  ;;  %v1221_v63 = vand.u32 2147483648, %v2643_v4 }
 0x3e5   : > { %v1074_v22 = vadd.f32 %v2591_v7, %v842_v35  ;;  %v1179_v39 = vadd.f32 1.28e-10, %v1171_v12  ;;  %v1170_v41 = vadd.f32 %v1162_v30, %v2447_v45  ;;  %v1083_v53 = vadd.f32 1.28e-10, %v1075_v28 }
 0x3e6   : > { %v1334_v17 = vpop.permute.xlu1 %1333  ;;  %1858 = vrsqrt.f32 %v2680_v31  ;;  %v2692_v45 = vmax.f32 %v1174_v50, 0.0  ;;  %vm1211_vm11 = vcmp.eq.f32.partialorder %v2680_v31, inf  ;;  %vm1213_vm13 = vcmp.eq.f32.partialorder %v2680_v31, 0.0 }
 0x3e7   : > { %v1851_v42 = vpop.eup %1850  ;;  %v2694_v7 = vmax.f32 %v1179_v39, 0.0  ;;  %v1178_v8 = vadd.f32 1.28e-10, %v1170_v41  ;;  %v1082_v38 = vadd.f32 1.28e-10, %v1074_v22  ;;  %v2704_v18 = vmax.f32 %v1083_v53, 0.0 }
 0x3e8   : > { %v1196_v58 = vmul.f32 %v1851_v42, %v2596_v26  ;;  %1860 = vrsqrt.f32 %v2692_v45  ;;  %v1327_v9 = vpop.permute.xlu0 %1326  ;;  %v1378_v61 = vmul.f32 %v1334_v17, %v2233_v52  ;;  %v1214_v12 = vand.u32 2147483648, %v2680_v31  ;;  %v1268_v22 = vld [vmem:[#allocation2] sm:$0xff]  ;;  %v1281_v42 = vld [vmem:[%s2131_s29 + $0x28] sm:$0xff] }
 0x3e9   : > { %v1853_v59 = vpop.eup %1852  ;;  %1862 = vrsqrt.f32 %v2694_v7  ;;  %v2718_v6 = vmax.f32 %v1178_v8, 0.0  ;;  %v2724_v40 = vmax.f32 %v1082_v38, 0.0  ;;  %v1377_v34 = vmul.f32 %v1327_v9, %v2236_v54  ;;  %v1273_v8 = vld [vmem:[#allocation2 + $0x28] sm:$0xff] }
 0x3ea   : > { %v1198_v1 = vsel %vm1197_vm2, %v2596_v26, %v1196_v58  ;;  %v2698_v24 = vpop.permute.xlu1 %1340  ;;  %v1189_v49 = vmul.f32 %v1853_v59, %v2611_v48  ;;  %1864 = vrsqrt.f32 %v2704_v18  ;;  %vm1204_vm14 = vcmp.eq.f32.partialorder %v2692_v45, inf }
 0x3eb   : > { %v1201_v44 = vsel %vm1199_vm4, %v1200_v55, %v1198_v1  ;;  %v1855_v16 = vpop.eup %1854  ;;  %1866 = vrsqrt.f32 %v2718_v6  ;;  %vm1206_vm15 = vcmp.eq.f32.partialorder %v2692_v45, 0.0  ;;  %v1207_v28 = vand.u32 2147483648, %v2692_v45 }
 0x3ec   : > { %v1245_v57 = vsub.f32 %v1105_v33, %v1201_v44  ;;  %v1191_v26 = vsel %vm1190_vm5, %v2611_v48, %v1189_v49  ;;  %v1224_v29 = vmul.f32 %v1855_v16, %v2624_v25  ;;  %v1269_v33 = vld [vmem:[#allocation2 + $0x8] sm:$0xff]  ;;  %v1355_v30 = vpop.permute.xlu0 %1354  ;;  %1868 = vrsqrt.f32 %v2724_v40 }
 0x3ed   : > { %v1194_v47 = vsel %vm1192_vm3, %v1193_v51, %v1191_v26  ;;  %v1857_v52 = vpop.eup %1856  ;;  %vm1239_vm0 = vcmp.eq.f32.partialorder %v2694_v7, inf  ;;  %vm1241_vm1 = vcmp.eq.f32.partialorder %v2694_v7, 0.0  ;;  %v1242_v53 = vand.u32 2147483648, %v2694_v7 }
 0x3ee   : > { %v1253_v27 = vadd.f32 0.2, %v1245_v57  ;;  %v1348_v20 = vpop.permute.xlu1 %1347  ;;  %v1244_v10 = vsub.f32 %v2657_v43, %v1194_v47  ;;  %v1226_v48 = vsel %vm1225_vm6, %v2624_v25, %v1224_v29  ;;  %v1217_v2 = vmul.f32 %v1857_v52, %v2643_v4  ;;  %v1280_v57 = vld [vmem:[%s2131_s29 + $0x20] sm:$0xff] }
 0x3ef   : > { %v1229_v21 = vsel %vm1227_vm7, %v1228_v32, %v1226_v48  ;;  %v1385_v58 = vadd.f32 %v1378_v61, %v1377_v34  ;;  %vm1143_vm2 = vcmp.eq.f32.partialorder %v2704_v18, inf  ;;  %v1379_v59 = vmul.f32 %v2698_v24, %v2252_v3  ;;  %v1272_v47 = vld [vmem:[#allocation2 + $0x20] sm:$0xff]  ;;  %v1279_v34 = vld [vmem:[%s2131_s29 + $0x18] sm:$0xff] }
 0x3f0   : > { %v1261_v56 = vmax.f32 %v1253_v27, 0.0  ;;  %v1252_v0 = vadd.f32 0.2, %v1244_v10  ;;  %v1249_v15 = vsub.f32 %v2672_v19, %v1229_v21  ;;  %v1219_v25 = vsel %vm1218_vm9, %v2643_v4, %v1217_v2  ;;  %v1369_v3 = vpop.permute.xlu0 %1368 }
 0x3f1   : > { %v1222_v50 = vsel %vm1220_vm10, %v1221_v63, %v1219_v25  ;;  %vm1232_vm4 = vcmp.eq.f32.partialorder %v2718_v6, inf  ;;  %vm1145_vm5 = vcmp.eq.f32.partialorder %v2704_v18, 0.0  ;;  %v1386_v9 = vadd.f32 %v1385_v58, %v1379_v59 }
 0x3f2   : > { %v1285_v43 = vmul.f32 %v1277_v23, %v1261_v56  ;;  %v1260_v35 = vmax.f32 %v1252_v0, 0.0  ;;  %v1257_v19 = vadd.f32 0.2, %v1249_v15  ;;  %v1362_v39 = vpop.permute.xlu1 %1361  ;;  %v1248_v55 = vsub.f32 %v2676_v46, %v1222_v50 }
 0x3f3   : > { %v1859_v41 = vpop.eup %1858  ;;  %v1380_v46 = vmul.f32 %v1348_v20, %v2260_v14  ;;  %v1381_v16 = vmul.f32 %v1355_v30, %v2244_v62  ;;  %v1382_v61 = vmul.f32 %v1362_v39, %v2241_v60  ;;  %v1383_v56 = vmul.f32 %v1369_v3, %v2249_v5 }
 0x3f4   : > { %v1293_v54 = vadd.f32 %v1285_v43, %v1269_v33  ;;  %v1284_v17 = vmul.f32 %v1276_v11, %v1260_v35  ;;  %v1265_v51 = vmax.f32 %v1257_v19, 0.0  ;;  %v1210_v4 = vmul.f32 %v1859_v41, %v2680_v31  ;;  %v1271_v35 = vld [vmem:[#allocation2 + $0x18] sm:$0xff] }
 0x3f5   : > { %v1256_v38 = vadd.f32 0.2, %v1248_v55  ;;  %v1861_v44 = vpop.eup %1860  ;;  %v1387_v62 = vadd.f32 %v1386_v9, %v1380_v46  ;;  %vm1234_vm3 = vcmp.eq.f32.partialorder %v2718_v6, 0.0  ;;  %vm1136_vm6 = vcmp.eq.f32.partialorder %v2724_v40, inf }
 0x3f6   : > { %1302 = vst.msk [vmem:[#allocation2 + $0x8] sm:$0xff] %vm1300_vm8, %v1293_v54  ;;  %v1292_v1 = vadd.f32 %v1284_v17, %v1268_v22  ;;  %v1289_v49 = vmul.f32 %v1281_v42, %v1265_v51  ;;  %v1212_v32 = vsel %vm1211_vm11, %v2680_v31, %v1210_v4  ;;  %v1863_v24 = vpop.eup %1862  ;;  %v1203_v14 = vmul.f32 %v1861_v44, %v2692_v45  ;;  %v1376_v23 = vpop.permute.xlu1 %1375  ;;  %v1278_v22 = vld [vmem:[%s2131_s29 + $0x10] sm:$0xff]  ;;  %v1320_v42 = vld [vmem:[#allocation4] sm:$0xff] }
 0x3f7   : > { %v1264_v26 = vmax.f32 %v1256_v38, 0.0  ;;  %v1215_v63 = vsel %vm1213_vm13, %v1214_v12, %v1212_v32  ;;  %v1238_v20 = vmul.f32 %v1863_v24, %v2694_v7  ;;  %v1146_v31 = vand.u32 2147483648, %v2704_v18  ;;  %v1865_v48 = vpop.eup %1864 }
 0x3f8   : > { %1301 = vst.msk [vmem:[#allocation2] sm:$0xff] %vm1300_vm8, %v1292_v1  ;;  %v1297_v27 = vadd.f32 %v1289_v49, %v1273_v8  ;;  %v1247_v29 = vsub.f32 %v2661_v36, %v1215_v63  ;;  %v1205_v52 = vsel %vm1204_vm14, %v2692_v45, %v1203_v14  ;;  %v1388_v0 = vadd.f32 %v1387_v62, %v1381_v16  ;;  %v1867_v21 = vpop.eup %1866  ;;  %v1283_v8 = vld [vmem:[%s2131_s29 + $0x38] sm:$0xff]  ;;  %v1282_v16 = vld [vmem:[%s2131_s29 + $0x30] sm:$0xff] }
 0x3f9   : > { %v1288_v10 = vmul.f32 %v1280_v57, %v1264_v26  ;;  %v1208_v36 = vsel %vm1206_vm15, %v1207_v28, %v1205_v52  ;;  %v1240_v33 = vsel %vm1239_vm0, %v2694_v7, %v1238_v20  ;;  %v1142_v5 = vmul.f32 %v1865_v48, %v2704_v18  ;;  %v1274_v26 = vld [vmem:[#allocation2 + $0x30] sm:$0xff] }
 0x3fa   : > { %1306 = vst.msk [vmem:[#allocation2 + $0x28] sm:$0xff] %vm1300_vm8, %v1297_v27  ;;  %v1255_v60 = vadd.f32 0.2, %v1247_v29  ;;  %v1246_v43 = vsub.f32 %v2665_v37, %v1208_v36  ;;  %v1384_v11 = vmul.f32 %v1376_v23, %v2257_v13  ;;  %v1231_v12 = vmul.f32 %v1867_v21, %v2718_v6  ;;  %v1869_v13 = vpop.eup %1868 }
 0x3fb   : > { %v1296_v2 = vadd.f32 %v1288_v10, %v1272_v47  ;;  %v1243_v45 = vsel %vm1241_vm1, %v1242_v53, %v1240_v33  ;;  %v1389_v30 = vadd.f32 %v1388_v0, %v1382_v61  ;;  %v1235_v28 = vand.u32 2147483648, %v2718_v6  ;;  %v1270_v53 = vld [vmem:[#allocation2 + $0x10] sm:$0xff] }
 0x3fc   : > { %v1263_v15 = vmax.f32 %v1255_v60, 0.0  ;;  %v1254_v25 = vadd.f32 0.2, %v1246_v43  ;;  %v1144_v37 = vsel %vm1143_vm2, %v2704_v18, %v1142_v5  ;;  %v1233_v7 = vsel %vm1232_vm4, %v2718_v6, %v1231_v12  ;;  %v1275_v6 = vld [vmem:[#allocation2 + $0x38] sm:$0xff] }
 0x3fd   : > { %1305 = vst.msk [vmem:[#allocation2 + $0x20] sm:$0xff] %vm1300_vm8, %v1296_v2  ;;  %v1147_v19 = vsel %vm1145_vm5, %v1146_v31, %v1144_v37  ;;  %v1390_v50 = vadd.f32 %v1389_v30, %v1383_v56  ;;  %v1135_v17 = vmul.f32 %v1869_v13, %v2724_v40  ;;  %v1236_v58 = vsel %vm1234_vm3, %v1235_v28, %v1233_v7 }
 0x3fe   : > { %v1287_v54 = vmul.f32 %v1279_v34, %v1263_v15  ;;  %v1262_v39 = vmax.f32 %v1254_v25, 0.0  ;;  %v1251_v41 = vsub.f32 %v1147_v19, %v1243_v45  ;;  %v1139_v51 = vand.u32 2147483648, %v2724_v40 }
 0x3ff   : > { %v1391_v4 = vadd.f32 %v1390_v50, %v1384_v11  ;;  %v1137_v1 = vsel %vm1136_vm6, %v2724_v40, %v1135_v17  ;;  %vm1138_vm7 = vcmp.eq.f32.partialorder %v2724_v40, 0.0 }
 0x400   : > { %v1295_v55 = vadd.f32 %v1287_v54, %v1271_v35  ;;  %v1286_v59 = vmul.f32 %v1278_v22, %v1262_v39  ;;  %v1259_v18 = vadd.f32 0.2, %v1251_v41  ;;  %v1140_v38 = vsel %vm1138_vm7, %v1139_v51, %v1137_v1 }
 0x401   : > { %v1392_v46 = vadd.f32 %v1391_v4, %v1320_v42  ;;  %v1250_v57 = vsub.f32 %v1140_v38, %v1236_v58 }
 0x402   : > { %1304 = vst.msk [vmem:[#allocation2 + $0x18] sm:$0xff] %vm1300_vm8, %v1295_v55  ;;  %v1294_v44 = vadd.f32 %v1286_v59, %v1270_v53  ;;  %v1267_v49 = vmax.f32 %v1259_v18, 0.0 }
 0x403   : > { %1393 = vst [vmem:[#allocation4] sm:$0xff] %v1392_v46  ;;  %v1258_v9 = vadd.f32 0.2, %v1250_v57 }
 0x404   : > { %1303 = vst.msk [vmem:[#allocation2 + $0x10] sm:$0xff] %vm1300_vm8, %v1294_v44  ;;  %v1291_v32 = vmul.f32 %v1283_v8, %v1267_v49 }
 0x405   : > { %v1266_v24 = vmax.f32 %v1258_v9, 0.0 }
 0x406   : > { %v1299_v3 = vadd.f32 %v1291_v32, %v1275_v6 }
 0x407   : > { %v1290_v40 = vmul.f32 %v1282_v16, %v1266_v24  ;;  %1397 = sbr.rel (%p1637_p2) target bundleno = 1254 (0x4e6), region = 52 }
 0x408   : > { %1308 = vst.msk [vmem:[#allocation2 + $0x38] sm:$0xff] %vm1300_vm8, %v1299_v3 }
 0x409   : > { %v1298_v63 = vadd.f32 %v1290_v40, %v1274_v26 }
 0x40b   : > { %1307 = vst.msk [vmem:[#allocation2 + $0x30] sm:$0xff] %vm1300_vm8, %v1298_v63 }
 0x40c   : > { %v1398_v14 = vld [vmem:[#allocation2] sm:$0xff]  ;;  %v1399_v61 = vld [vmem:[#allocation2 + $0x8] sm:$0xff]  ;;  %v1400_v27 = vld [vmem:[#allocation2 + $0x10] sm:$0xff]  ;;  %vm1431_vm9 = vcmask 0  }
 0x40d   : > { %v1401_v47 = vld [vmem:[#allocation2 + $0x18] sm:$0xff]  ;;  %v1406_v29 = vsel %vm1300_vm8, %v1398_v14, 0.0  ;;  %v1407_v20 = vsel %vm1300_vm8, %v1399_v61, 0.0  ;;  %v1409_v62 = vsel %vm1300_vm8, %v1400_v27, 0.0  ;;  %v1402_v23 = vld [vmem:[#allocation2 + $0x20] sm:$0xff]  ;;  %v1403_v31 = vld [vmem:[#allocation2 + $0x28] sm:$0xff] }
 0x40e   : > { %v1408_v10 = vadd.f32 %v1407_v20, %v1406_v29  ;;  %v1411_v52 = vsel %vm1300_vm8, %v1401_v47, 0.0  ;;  %v1413_v48 = vsel %vm1300_vm8, %v1402_v23, 0.0  ;;  %v1415_v33 = vsel %vm1300_vm8, %v1403_v31, 0.0  ;;  %v1433_v15 = vld [vmem:[#allocation3] sm:$0x1]  ;;  %v1435_v12 = vld [vmem:[#allocation4] sm:$0xff] }
 0x40f   : > { %v1405_v0 = vld [vmem:[#allocation2 + $0x38] sm:$0xff]  ;;  %1434 = vst.msk [vmem:[%s378_s19] sm:$0x1] %vm1318_vm12, %v1433_v15  ;;  %1436 = vst [vmem:[%s2141_s13] sm:$0xff] %v1435_v12 }
 0x410   : > { %v1410_v56 = vadd.f32 %v1409_v62, %v1408_v10  ;;  %v1419_v43 = vsel %vm1300_vm8, %v1405_v0, 0.0 }
 0x412   : > { %v1404_v60 = vld [vmem:[#allocation2 + $0x30] sm:$0xff]  ;;  %v1412_v36 = vadd.f32 %v1411_v52, %v1410_v56 }
 0x413   : > { %v1417_v2 = vsel %vm1300_vm8, %v1404_v60, 0.0 }
 0x414   : > { %v1414_v21 = vadd.f32 %v1413_v48, %v1412_v36 }
 0x416   : > { %v1416_v34 = vadd.f32 %v1415_v33, %v1414_v21 }
 0x418   : > { %v1418_v5 = vadd.f32 %v1417_v2, %v1416_v34 }
 0x41a   : > { %v1420_v11 = vadd.f32 %v1419_v43, %v1418_v5 }
 0x41c   : > { %1421 = vadd.xlane.f32.xlu0 %v1420_v11 }
 0x4a5   : > { %v1422_v45 = vpop.xlane.xlu0 %1421 }
 0x4a6   : > { %v1423_v30 = vrot.slane %v1422_v45, 4 }
 0x4a8   : > { %v1424_v35 = vadd.f32 %v1423_v30, %v1422_v45 }
 0x4aa   : > { %v1425_v25 = vrot.slane %v1424_v35, 2 }
 0x4ac   : > { %v1426_v28 = vadd.f32 %v1425_v25, %v1424_v35 }
 0x4ae   : > { %v1427_v37 = vrot.slane %v1426_v28, 1 }
 0x4b0   : > { %v1428_v13 = vadd.f32 %v1427_v37, %v1426_v28 }
 0x4b2   : > { %1743 = vpush %v1428_v13 }
 0x4e3   : > { %s1744_s29 = spop %1743 }
 0x4e4   : > { %v1430_v54 = vstv %s1744_s29 }
 0x4e5   : > { %1432 = vst.msk [vmem:[%s416_s18] sm:$0x1] %vm1431_vm9, %v1430_v54 }
 0x4e6 PF: > { %s1639_s23 = sshll.u32 %s1980_s9, 4  ;;  %s1461_s11 = sshll.u32 %s378_s19, 4  ;;  %s1462_s11 = int_to_ptr.vmem [resolvable:$true] %s1461_s11 }
 0x4e7   : > { %s1459_s26 = scalar_lea.hbm %s2905_s7, %s1639_s23  ;;  %s1441_s15 = scalar_lea.sflag [#allocation6], %s2112_s22 }
 0x4e8   : > { %s1870_s21 = scalar_lea.vmem %s1462_s11, 16  ;;  %s1995_s28 = smov [#allocation5]  }
 0x4e9   : > { %p1871_p4 = scmp.ne.s32.totalorder %s1462_s11, %s1870_s21  ;;  %s1874_s18 = sshll.u32 %s1995_s28, 4  ;;  %s1875_s18 = int_to_ptr.vmem [resolvable:$false] %s1874_s18 }
 0x4ea   : > { %s1876_s24 = scalar_lea.vmem %s1875_s18, 32  ;;  %p1877_p7 = scmp.lt.s32.totalorder %s1462_s11, %s1875_s18 }
 0x4eb   : > { %p1872_p5 = pnand %p1871_p4, %p2091_p3  ;;  %p1878_p8 = scmp.lt.s32.totalorder %s1876_s24, %s1870_s21 }
 0x4ed   : > { %p1873_p6 = pneg %p1872_p5  ;;  %p1879_p10 = por %p1878_p8, %p1877_p7 }
 0x4ef   : > { %p1880_p11 = pnand %p1879_p10, %p1873_p6 }
 0x4f1   : > { %1883 = shalt.err (!%p1880_p11)
}
 0x4f2   : > { %s1884_s14 = scalar_lea.hbm %s1459_s26, 16  ;;  %s1888_s29 = scalar_lea.hbm %s2905_s7, 32 }
 0x4f3   : > { %p1885_p12 = scmp.ne.s32.totalorder %s1459_s26, %s1884_s14  ;;  %p1889_p1 = scmp.lt.s32.totalorder %s1459_s26, %s2905_s7 }
 0x4f4   : > { %p1890_p2 = scmp.lt.s32.totalorder %s1888_s29, %s1884_s14 }
 0x4f5   : > { %p1886_p13 = pnand %p1885_p12, %p2091_p3 }
 0x4f6   : > { %p1891_p4 = por %p1890_p2, %p1889_p1 }
 0x4f7   : > { %p1887_p0 = pneg %p1886_p13 }
 0x4f9   : > { %p1892_p5 = pnand %p1891_p4, %p1887_p0 }
 0x4fb   : > { %1895 = shalt.err (!%p1892_p5)
}
 0x4fc   : > { %1745 = dma.vmem_to_hbm [thread:$0]  (%p2091_p3), %s1462_s11, 16, %s1459_s26, %s1441_s15  }
 0x4fd   : > { %s1640_s23 = sshll.u32 %s1980_s9, 7  ;;  %s1474_s25 = sshll.u32 %s2141_s13, 4  ;;  %s1475_s25 = int_to_ptr.vmem [resolvable:$true] %s1474_s25 }
 0x4fe   : > { %s1472_s28 = scalar_lea.hbm %s2906_s8, %s1640_s23  ;;  %s1445_s18 = scalar_lea.sflag [#allocation8], %s2112_s22 }
 0x4ff   : > { %s1896_s24 = scalar_lea.vmem %s1475_s25, 128  ;;  %s1996_s14 = smov [#allocation7]  }
 0x500   : > { %p1897_p6 = scmp.ne.s32.totalorder %s1475_s25, %s1896_s24  ;;  %s1900_s19 = sshll.u32 %s1996_s14, 4  ;;  %s1901_s19 = int_to_ptr.vmem [resolvable:$false] %s1900_s19 }
 0x501   : > { %s1902_s20 = scalar_lea.vmem %s1901_s19, 256  ;;  %p1903_p10 = scmp.lt.s32.totalorder %s1475_s25, %s1901_s19 }
 0x502   : > { %p1898_p7 = pnand %p1897_p6, %p2091_p3  ;;  %p1904_p11 = scmp.lt.s32.totalorder %s1902_s20, %s1896_s24 }
 0x504   : > { %p1899_p8 = pneg %p1898_p7  ;;  %p1905_p12 = por %p1904_p11, %p1903_p10 }
 0x506   : > { %p1906_p13 = pnand %p1905_p12, %p1899_p8 }
 0x508   : > { %1909 = shalt.err (!%p1906_p13)
}
 0x509   : > { %s1910_s9 = scalar_lea.hbm %s1472_s28, 128  ;;  %s1914_s26 = scalar_lea.hbm %s2906_s8, 256 }
 0x50a   : > { %p1911_p0 = scmp.ne.s32.totalorder %s1472_s28, %s1910_s9  ;;  %p1915_p4 = scmp.lt.s32.totalorder %s1472_s28, %s2906_s8 }
 0x50b   : > { %p1916_p5 = scmp.lt.s32.totalorder %s1914_s26, %s1910_s9 }
 0x50c   : > { %p1912_p1 = pnand %p1911_p0, %p2091_p3 }
 0x50d   : > { %p1917_p6 = por %p1916_p5, %p1915_p4 }
 0x50e   : > { %p1913_p2 = pneg %p1912_p1 }
 0x510   : > { %p1918_p7 = pnand %p1917_p6, %p1913_p2 }
 0x512   : > { %1921 = shalt.err (!%p1918_p7)
}
 0x513   : > { %1746 = dma.vmem_to_hbm [thread:$0]  (%p2091_p3), %s1475_s25, 128, %s1472_s28, %s1445_s18  }
 0x514 PF: > { %p1756_p8 = scmp.ge.s32.totalorder %s1992_s12, 2  ;;  %s1492_s30 = sand.u32 1, %s1964_s27  }
 0x515   : > { %s1493_s16 = scalar_lea.sflag [#allocation6], %s1492_s30 }
 0x516   : > { %p1750_p10 = pnand %p1756_p8, %p2101_p9 }
 0x518   : > { %p1751_p11 = pneg %p1750_p10 }
 0x51a   : > { %1955 = dma.done.wait (%p1751_p11), %s1493_s16, 16  }
 0x51b   : > { %1957 = vsyncadd (%p1751_p11), %s1493_s16, 4294967280  ;;  %s1501_s23 = scalar_lea.sflag [#allocation8], %s1492_s30 }
 0x51c   : > { %1959 = dma.done.wait (%p1751_p11), %s1501_s23, 128  }
 0x51d   : > { %1961 = vsyncadd (%p1751_p11), %s1501_s23, 4294967168  ;;  %s25_s12 = sadd.s32 1, %s1992_s12   ;;  %s2936_s27 = sld [smem:[#allocation11_spill]] }
 0x51e   : > { %p22_p12 = scmp.ge.s32.totalorder %s25_s12, 6   ;;  %s2937_s28 = sld [smem:[#allocation12_spill]] }
 0x51f   : > { %s2938_s29 = sld [smem:[#allocation18_spill]] }
 0x520   : > { %s2939_s30 = sld [smem:[#allocation13_spill]]  ;;  %24 = sbr.rel (!%p22_p12) target bundleno = 7 (0x7), region = 122 }
 0x521   : > { %s2940_s9 = sld [smem:[#allocation14_spill]] }
 0x522   : > { %s2941_s10 = sld [smem:[#allocation15_spill]] }
 0x523   : > { %s2942_s11 = sld [smem:[#allocation16_spill]] }
 0x525   :  { %1506 = vsyncpa [#allocation6], 1 }
 0x526   :  { %1508 = vsyncpa [#allocation6 + $0x1], 1 }
 0x527   :  { %1509 = vsyncpa [#allocation8], 1 }
 0x528   :  { %1511 = vsyncpa [#allocation8 + $0x1], 1 }

</bundles_post_ra>
